<compile_context>
chip_gen: v6e
topology: v6e:2x2x1
jax: 0.10.0
libtpu: 0.0.40
codegen_flags: <defaults>
</compile_context>

<pallas_src>
import math
from functools import partial

import jax
import jax.numpy as jnp
from jax import lax
from jax.experimental import pallas as pl
from jax.experimental.pallas import tpu as pltpu

EPS = 1e-5                      # torch.nn.LayerNorm default
C_DTYPE = jnp.bfloat16          # MXU-input dtype; accumulation stays f32


def _pick_vmem_limit():
  # ~3/4 of physical VMEM: ~96 MiB on 128-MiB v5e/v6e, 48 MiB on 64-MiB v7x.
  try:
    cap = int(pltpu.get_tpu_info().vmem_capacity_bytes)
  except Exception:
    cap = 64 * 1024 * 1024      # conservative fallback
  return min((cap * 3) // 4, 112 * 1024 * 1024)


VMEM_LIMIT = _pick_vmem_limit()


# ----------------------------------------------------------------------------
# in-kernel helpers (statistics in f32)
# ----------------------------------------------------------------------------
def _layernorm(x, gamma, beta):
  mu = jnp.mean(x, axis=-1, keepdims=True)
  var = jnp.mean(jnp.square(x - mu), axis=-1, keepdims=True)
  return (x - mu) * lax.rsqrt(var + EPS) * gamma + beta


def _gelu(x):
  # tanh-approx GELU (EUP slot) -- small known deviation from torch's erf GELU.
  c = math.sqrt(2.0 / math.pi)
  return 0.5 * x * (1.0 + jnp.tanh(c * (x + 0.044715 * x * x * x)))


def _attention(x, ln_g, ln_b, wqkv, wout, *, heads, dim_head):
  """Pre-norm MHA on a (Bt, N, dim) tile.

  wqkv: (dim, 3*inner) bf16, columns = [q | k | v] (head-major inside each
        slot, torch to_qkv column order); q columns pre-scaled by dh**-0.5.
  wout: (inner, dim) bf16.
  """
  bt, n, dim = x.shape
  inner = heads * dim_head
  cdt = wqkv.dtype

  xn = _layernorm(x, ln_g, ln_b)                                    # f32
  x2 = xn.reshape(bt * n, dim).astype(cdt)
  # One lane-dense QKV GEMM: (Bt*N, dim) @ (dim, 3*inner)
  qkv = jnp.dot(x2, wqkv, preferred_element_type=jnp.float32).astype(cdt)
  qkv = qkv.reshape(bt, n, 3 * heads, dim_head)
  qkv = jnp.transpose(qkv, (0, 2, 1, 3))                            # (Bt,3H,N,Dh)
  q = qkv[:, :heads].reshape(bt * heads, n, dim_head)               # pre-scaled
  k = qkv[:, heads:2 * heads].reshape(bt * heads, n, dim_head)
  v = qkv[:, 2 * heads:].reshape(bt * heads, n, dim_head)

  # 'bqd,bkd->bqk' (transpose folded into the contraction)
  dots = lax.dot_general(q, k, (((2,), (2,)), ((0,), (0,))),
                         preferred_element_type=jnp.float32)        # (BtH,N,N)
  dots = dots - jnp.max(dots, axis=-1, keepdims=True)
  e = jnp.exp(dots)
  p = e * pl.reciprocal(jnp.sum(e, axis=-1, keepdims=True), approx=True)
  # 'bqk,bkd->bqd'
  o = lax.dot_general(p.astype(cdt), v, (((2,), (1,)), ((0,), (0,))),
                      preferred_element_type=jnp.float32)           # (BtH,N,Dh)
  o = o.astype(wout.dtype).reshape(bt, heads, n, dim_head)
  o = jnp.transpose(o, (0, 2, 1, 3)).reshape(bt * n, inner)
  # One out-projection GEMM; the head "sum" is the K contraction inside MXU.
  out = jnp.dot(o, wout, preferred_element_type=jnp.float32)        # (Bt*N,dim)
  return out.reshape(bt, n, dim)


def _feedforward(x, ln_g, ln_b, w1, b1, w2, b2):
  bt, n, dim = x.shape
  xn = _layernorm(x, ln_g, ln_b).reshape(bt * n, dim)
  h = jnp.dot(xn.astype(w1.dtype), w1, preferred_element_type=jnp.float32) + b1
  h = _gelu(h)
  y = jnp.dot(h.astype(w2.dtype), w2, preferred_element_type=jnp.float32) + b2
  return y.reshape(bt, n, dim)


# ----------------------------------------------------------------------------
# fused kernel: patch-embed prologue + transformer depth-loop + pool epilogue
# ----------------------------------------------------------------------------
def vit_kernel(patch_ref, pe_ref, patch_ln_ref, embed_w_ref, evec_ref,
               lvec_ref, b1_ref, wqkv_ref, wout_ref, w1_ref, w2_ref,
               o_ref, xs_ref, *, heads, dim_head):
  # grid = (B // Bt, depth); xs_ref (VMEM scratch) carries the (Bt, N, dim)
  # activation across the depth axis, so per-layer activations never touch HBM
  # and per-layer weights are streamed once per batch tile.
  layer = pl.program_id(1)
  evec = evec_ref[...]                    # (8, dim): [embed_b, ln2_g, ln2_b,
                                          #            final_g, final_b, 0,0,0]

  @pl.when(layer == 0)
  def _():
    # Patch embedding fused into the first layer's prologue:
    # LN(patch_dim) -> Linear -> LN(dim) -> + sincos pos-emb.
    p = patch_ref[...]                    # (Bt, N, patch_dim) f32
    bt, n, pdim = p.shape
    ln1 = patch_ln_ref[...]               # (2, patch_dim): [gamma; beta]
    x = _layernorm(p, ln1[0:1], ln1[1:2])
    w = embed_w_ref[...]
    x = jnp.dot(x.reshape(bt * n, pdim).astype(w.dtype), w,
                preferred_element_type=jnp.float32)
    x = x + evec[0:1]                     # embed bias
    x = _layernorm(x, evec[1:2], evec[2:3])
    xs_ref[...] = x.reshape(bt, n, -1) + pe_ref[...]

  x = xs_ref[...]                         # (Bt, N, dim) f32
  lv = lvec_ref[0]                        # (8, dim): [aln_g, aln_b, fln_g,
                                          #            fln_b, b2, 0, 0, 0]
  x = x + _attention(x, lv[0:1], lv[1:2], wqkv_ref[0], wout_ref[0],
                     heads=heads, dim_head=dim_head)                 # residual
  x = x + _feedforward(x, lv[2:3], lv[3:4], w1_ref[0], b1_ref[0],
                       w2_ref[0], lv[4:5])                           # residual
  xs_ref[...] = x

  @pl.when(layer == pl.num_programs(1) - 1)
  def _():
    xn = _layernorm(x, evec[3:4], evec[4:5])                         # final LN
    o_ref[...] = jnp.mean(xn, axis=1, keepdims=True)                 # (Bt,1,dim)


# ----------------------------------------------------------------------------
# pallas_call wrapper
# ----------------------------------------------------------------------------
def vit_pallas(patches, pe, params, *, heads, dim_head, batch_tile=None):
  b, n, patch_dim = patches.shape
  dim = params["embed_w"].shape[1]
  depth = params["wqkv"].shape[0]
  mlp_dim = params["w1"].shape[-1]
  inner = heads * dim_head

  # Batch tile amortizes per-layer weight DMA over Bt images.  (On v7x with
  # B > Bt the leading "parallel" axis also spreads tiles over the two TCs.)
  bt = batch_tile if batch_tile is not None else min(b, 8)
  assert b % bt == 0, (b, bt)
  nb = b // bt

  def const_spec(shape):
    nd = len(shape)
    return pl.BlockSpec(shape, lambda i, l, _nd=nd: (0,) * _nd)

  def layer_spec(shape):                  # per-layer slab of depth-stacked array
    nd = len(shape)
    return pl.BlockSpec((1,) + tuple(shape[1:]),
                        lambda i, l, _nd=nd: (l,) + (0,) * (_nd - 1))

  weight_bytes = sum(int(params[k].nbytes)
                     for k in ("lvecs", "b1", "wqkv", "wout", "w1", "w2"))
  flops = 2 * b * (n * patch_dim * dim
                   + depth * n * (3 * dim * inner + 2 * n * inner
                                  + inner * dim + 2 * dim * mlp_dim))
  cost = pl.CostEstimate(
      flops=int(flops),
      transcendentals=int(b * depth * (heads * n * n + n * mlp_dim)),
      bytes_accessed=int(patches.nbytes + pe.nbytes
                         + nb * weight_bytes + b * dim * 4))

  kernel = partial(vit_kernel, heads=heads, dim_head=dim_head)
  pooled = pl.pallas_call(
      kernel,
      out_shape=jax.ShapeDtypeStruct((b, 1, dim), jnp.float32),
      grid=(nb, depth),
      in_specs=[
          pl.BlockSpec((bt, n, patch_dim), lambda i, l: (i, 0, 0)),
          const_spec(pe.shape),
          const_spec(params["patch_ln"].shape),
          const_spec(params["embed_w"].shape),
          const_spec(params["embed_vecs"].shape),
          layer_spec(params["lvecs"].shape),
          layer_spec(params["b1"].shape),
          layer_spec(params["wqkv"].shape),
          layer_spec(params["wout"].shape),
          layer_spec(params["w1"].shape),
          layer_spec(params["w2"].shape),
      ],
      out_specs=pl.BlockSpec((bt, 1, dim), lambda i, l: (i, 0, 0)),
      scratch_shapes=[pltpu.VMEM((bt, n, dim), jnp.float32)],
      compiler_params=pltpu.CompilerParams(
          dimension_semantics=("parallel", "arbitrary"),
          vmem_limit_bytes=VMEM_LIMIT),
      cost_estimate=cost,
  )(patches, pe, params["patch_ln"], params["embed_w"], params["embed_vecs"],
    params["lvecs"], params["b1"], params["wqkv"], params["wout"],
    params["w1"], params["w2"])
  return pooled.reshape(b, dim)


# ----------------------------------------------------------------------------
# glue: patchify, sincos pos-emb, parameter init, full forward
# ----------------------------------------------------------------------------
def posemb_sincos_2d(h, w, dim, temperature=10000.0, dtype=jnp.float32):
  assert dim % 4 == 0, "feature dimension must be multiple of 4"
  y, x = jnp.meshgrid(jnp.arange(h), jnp.arange(w), indexing="ij")
  omega = jnp.arange(dim // 4, dtype=jnp.float32) / (dim // 4 - 1)
  omega = 1.0 / (temperature ** omega)
  y = y.reshape(-1).astype(jnp.float32)[:, None] * omega[None, :]
  x = x.reshape(-1).astype(jnp.float32)[:, None] * omega[None, :]
  pe = jnp.concatenate((jnp.sin(x), jnp.cos(x), jnp.sin(y), jnp.cos(y)), axis=1)
  return pe.astype(dtype)


def init_params(key, *, patch_dim, dim, depth, heads, dim_head, mlp_dim):
  inner = heads * dim_head
  scale = dim_head ** -0.5
  keys = jax.random.split(key, 1 + 4 * depth)
  kit = iter(keys)

  def lin(fan_in, fan_out):   # stored transposed to (in, out): y = x @ W
    return jax.random.normal(next(kit), (fan_in, fan_out), jnp.float32) * 0.02

  # Patch-embed LN (gamma; beta) packed as (2, patch_dim).
  patch_ln = jnp.concatenate(
      [jnp.ones((1, patch_dim), jnp.float32),
       jnp.zeros((1, patch_dim), jnp.float32)], axis=0)
  # (8, dim): [embed_b, pe_ln2_g, pe_ln2_b, final_ln_g, final_ln_b, pad...]
  embed_vecs = jnp.stack(
      [jnp.zeros(dim), jnp.ones(dim), jnp.zeros(dim),
       jnp.ones(dim), jnp.zeros(dim),
       jnp.zeros(dim), jnp.zeros(dim), jnp.zeros(dim)]).astype(jnp.float32)
  # Per-layer packed vectors (8, dim): [aln_g, aln_b, fln_g, fln_b, b2, pad...]
  lvec_base = jnp.stack(
      [jnp.ones(dim), jnp.zeros(dim), jnp.ones(dim), jnp.zeros(dim),
       jnp.zeros(dim), jnp.zeros(dim), jnp.zeros(dim), jnp.zeros(dim)]
  ).astype(jnp.float32)

  wqkv_l, wout_l, w1_l, w2_l = [], [], [], []
  for _ in range(depth):
    # torch to_qkv weight is (3*inner, dim); transposed -> columns [q | k | v],
    # head-major inside each slot.  Fold the softmax scale into the q columns.
    wqkv = lin(dim, 3 * inner)
    wqkv = wqkv.at[:, :inner].multiply(scale)
    wqkv_l.append(wqkv)
    wout_l.append(lin(inner, dim))
    w1_l.append(lin(dim, mlp_dim))
    w2_l.append(lin(mlp_dim, dim))

  params = {
      "patch_ln": patch_ln,
      "embed_w": lin(patch_dim, dim).astype(C_DTYPE),
      "embed_vecs": embed_vecs,
      "lvecs": jnp.tile(lvec_base[None], (depth, 1, 1)),       # (depth, 8, dim)
      "b1": jnp.zeros((depth, 1, mlp_dim), jnp.float32),
      "wqkv": jnp.stack(wqkv_l).astype(C_DTYPE),   # (depth, dim, 3*inner)
      "wout": jnp.stack(wout_l).astype(C_DTYPE),   # (depth, inner, dim)
      "w1": jnp.stack(w1_l).astype(C_DTYPE),       # (depth, dim, mlp_dim)
      "w2": jnp.stack(w2_l).astype(C_DTYPE),       # (depth, mlp_dim, dim)
  }
  return params


def simple_vit_forward(img, params, *, patch_size, heads, dim_head,
                       batch_tile=None):
  b, H, W = img.shape
  p = patch_size
  hp, wp = H // p, W // p
  n = hp * wp
  patch_dim = p * p            # channels = 1 (forward does img.unsqueeze(1))
  dim = params["embed_w"].shape[1]

  # rearrange 'b c (h p1) (w p2) -> b (h w) (p1 p2 c)' with c = 1
  x = img.reshape(b, 1, hp, p, wp, p)
  x = jnp.transpose(x, (0, 2, 4, 3, 5, 1)).reshape(b, n, patch_dim)
  pe = posemb_sincos_2d(hp, wp, dim)

  # PatchDropout(prob=0) in eval mode is identity; to_latent is Identity;
  # linear_head is never invoked by this forward.
  return vit_pallas(x, pe, params, heads=heads, dim_head=dim_head,
                    batch_tile=batch_tile)


# ----------------------------------------------------------------------------
if __name__ == "__main__":
  B, H, W = 2, 16, 16
  PATCH = 4          # -> 4x4 = 16 patches, patch_dim = 16
  DIM = 32           # multiple of 4 for sincos emb
  DEPTH = 2
  HEADS = 2
  DIM_HEAD = 16
  MLP_DIM = 64

  key = jax.random.PRNGKey(0)
  k_img, k_par = jax.random.split(key)
  img = jax.random.normal(k_img, (B, H, W), jnp.float32)
  params = init_params(k_par, patch_dim=PATCH * PATCH, dim=DIM, depth=DEPTH,
                       heads=HEADS, dim_head=DIM_HEAD, mlp_dim=MLP_DIM)

  fwd = jax.jit(partial(simple_vit_forward, patch_size=PATCH,
                        heads=HEADS, dim_head=DIM_HEAD))
  out = jax.block_until_ready(fwd(img, params))
  assert out.shape == (B, DIM), out.shape
  assert bool(jnp.all(jnp.isfinite(out)))
  print("KERNEL_OK")
</pallas_src>

<mosaic_0001>
module attributes {stable_mosaic.version = 11 : i64} {
  func.func @vit_kernel(%arg0: i32, %arg1: i32, %arg2: memref<2x16x16xf32, #tpu.memory_space<vmem>>, %arg3: memref<16x32xf32, #tpu.memory_space<vmem>>, %arg4: memref<2x16xf32, #tpu.memory_space<vmem>>, %arg5: memref<16x32xbf16, #tpu.memory_space<vmem>>, %arg6: memref<8x32xf32, #tpu.memory_space<vmem>>, %arg7: memref<1x8x32xf32, #tpu.memory_space<vmem>>, %arg8: memref<1x1x64xf32, #tpu.memory_space<vmem>>, %arg9: memref<1x32x96xbf16, #tpu.memory_space<vmem>>, %arg10: memref<1x32x32xbf16, #tpu.memory_space<vmem>>, %arg11: memref<1x32x64xbf16, #tpu.memory_space<vmem>>, %arg12: memref<1x64x32xbf16, #tpu.memory_space<vmem>>, %arg13: memref<2x1x32xf32, #tpu.memory_space<vmem>>, %arg14: memref<2x16x32xf32, #tpu.memory_space<vmem>>) attributes {dimension_semantics = [#tpu.dimension_semantics<parallel>, #tpu.dimension_semantics<arbitrary>], iteration_bounds = array<i64: 1, 2>, scalar_prefetch = 0 : i64, scratch_operands = 1 : i64, tpu.core_type = #tpu.core_type<tc>, window_params = [{transform_indices = @transform_0, window_bounds = array<i64: 2, 16, 16>}, {pipeline_mode = #tpu.pipeline_mode<synchronous>, transform_indices = @transform_1, window_bounds = array<i64: 16, 32>}, {pipeline_mode = #tpu.pipeline_mode<synchronous>, transform_indices = @transform_2, window_bounds = array<i64: 2, 16>}, {pipeline_mode = #tpu.pipeline_mode<synchronous>, transform_indices = @transform_3, window_bounds = array<i64: 16, 32>}, {pipeline_mode = #tpu.pipeline_mode<synchronous>, transform_indices = @transform_4, window_bounds = array<i64: 8, 32>}, {transform_indices = @transform_5, window_bounds = array<i64: 1, 8, 32>}, {transform_indices = @transform_6, window_bounds = array<i64: 1, 1, 64>}, {transform_indices = @transform_7, window_bounds = array<i64: 1, 32, 96>}, {transform_indices = @transform_8, window_bounds = array<i64: 1, 32, 32>}, {transform_indices = @transform_9, window_bounds = array<i64: 1, 32, 64>}, {transform_indices = @transform_10, window_bounds = array<i64: 1, 64, 32>}, {transform_indices = @transform_11, window_bounds = array<i64: 2, 1, 32>}]} {
    %c0 = arith.constant 0 : index
    %c0_0 = arith.constant 0 : index
    %0 = vector.load %arg6[%c0, %c0_0] : memref<8x32xf32, #tpu.memory_space<vmem>>, vector<8x32xf32>
    %c0_i32 = arith.constant 0 : i32
    %1 = arith.cmpi eq, %arg1, %c0_i32 : i32
    %2 = arith.extui %1 : i1 to i32
    %c0_i32_1 = arith.constant 0 : i32
    %3 = arith.cmpi ne, %2, %c0_i32_1 : i32
    scf.if %3 {
      %c0_48 = arith.constant 0 : index
      %c0_49 = arith.constant 0 : index
      %c0_50 = arith.constant 0 : index
      %130 = vector.load %arg2[%c0_48, %c0_49, %c0_50] : memref<2x16x16xf32, #tpu.memory_space<vmem>>, vector<2x16x16xf32>
      %c0_51 = arith.constant 0 : index
      %c0_52 = arith.constant 0 : index
      %131 = vector.load %arg4[%c0_51, %c0_52] : memref<2x16xf32, #tpu.memory_space<vmem>>, vector<2x16xf32>
      %132 = vector.extract_strided_slice %131 {offsets = [0, 0], sizes = [1, 16], strides = [1, 1]} : vector<2x16xf32> to vector<1x16xf32>
      %133 = vector.extract_strided_slice %131 {offsets = [1, 0], sizes = [1, 16], strides = [1, 1]} : vector<2x16xf32> to vector<1x16xf32>
      %cst_53 = arith.constant dense<0.000000e+00> : vector<2x16xf32>
      %134 = vector.multi_reduction <add>, %130, %cst_53 [2] : vector<2x16x16xf32> to vector<2x16xf32>
      %135 = vector.shape_cast %134 : vector<2x16xf32> to vector<2x16x1xf32>
      %cst_54 = arith.constant 1.600000e+01 : f32
      %136 = vector.broadcast %cst_54 : f32 to vector<2x16x1xf32>
      %137 = arith.divf %135, %136 : vector<2x16x1xf32>
      %138 = vector.broadcast %137 : vector<2x16x1xf32> to vector<2x16x16xf32>
      %139 = arith.subf %130, %138 : vector<2x16x16xf32>
      %140 = arith.mulf %139, %139 : vector<2x16x16xf32>
      %cst_55 = arith.constant dense<0.000000e+00> : vector<2x16xf32>
      %141 = vector.multi_reduction <add>, %140, %cst_55 [2] : vector<2x16x16xf32> to vector<2x16xf32>
      %142 = vector.shape_cast %141 : vector<2x16xf32> to vector<2x16x1xf32>
      %cst_56 = arith.constant 1.600000e+01 : f32
      %143 = vector.broadcast %cst_56 : f32 to vector<2x16x1xf32>
      %144 = arith.divf %142, %143 : vector<2x16x1xf32>
      %145 = vector.broadcast %137 : vector<2x16x1xf32> to vector<2x16x16xf32>
      %146 = arith.subf %130, %145 : vector<2x16x16xf32>
      %cst_57 = arith.constant 9.99999974E-6 : f32
      %147 = vector.broadcast %cst_57 : f32 to vector<2x16x1xf32>
      %148 = arith.addf %144, %147 : vector<2x16x1xf32>
      %149 = math.rsqrt %148 : vector<2x16x1xf32>
      %150 = vector.broadcast %149 : vector<2x16x1xf32> to vector<2x16x16xf32>
      %151 = arith.mulf %146, %150 : vector<2x16x16xf32>
      %152 = vector.shape_cast %132 : vector<1x16xf32> to vector<1x1x16xf32>
      %153 = vector.broadcast %152 : vector<1x1x16xf32> to vector<2x16x16xf32>
      %154 = arith.mulf %151, %153 : vector<2x16x16xf32>
      %155 = vector.shape_cast %133 : vector<1x16xf32> to vector<1x1x16xf32>
      %156 = vector.broadcast %155 : vector<1x1x16xf32> to vector<2x16x16xf32>
      %157 = arith.addf %154, %156 : vector<2x16x16xf32>
      %c0_58 = arith.constant 0 : index
      %c0_59 = arith.constant 0 : index
      %158 = vector.load %arg5[%c0_58, %c0_59] : memref<16x32xbf16, #tpu.memory_space<vmem>>, vector<16x32xbf16>
      %159 = vector.shape_cast %157 : vector<2x16x16xf32> to vector<32x16xf32>
      %160 = arith.truncf %159 : vector<32x16xf32> to vector<32x16xbf16>
      %cst_60 = arith.constant dense<0.000000e+00> : vector<32x32xf32>
      %161 = tpu.matmul %160, %158, %cst_60 {dimension_numbers = #tpu.dot_dimension_numbers<[1], [0], [0], [1], [0, 0, 1, 1], [], []>} : vector<32x16xbf16>, vector<16x32xbf16>, vector<32x32xf32> -> vector<32x32xf32>
      %162 = vector.extract_strided_slice %0 {offsets = [0, 0], sizes = [1, 32], strides = [1, 1]} : vector<8x32xf32> to vector<1x32xf32>
      %163 = vector.broadcast %162 : vector<1x32xf32> to vector<32x32xf32>
      %164 = arith.addf %161, %163 : vector<32x32xf32>
      %165 = vector.extract_strided_slice %0 {offsets = [1, 0], sizes = [1, 32], strides = [1, 1]} : vector<8x32xf32> to vector<1x32xf32>
      %166 = vector.extract_strided_slice %0 {offsets = [2, 0], sizes = [1, 32], strides = [1, 1]} : vector<8x32xf32> to vector<1x32xf32>
      %cst_61 = arith.constant dense<0.000000e+00> : vector<32xf32>
      %167 = vector.multi_reduction <add>, %164, %cst_61 [1] : vector<32x32xf32> to vector<32xf32>
      %168 = vector.shape_cast %167 : vector<32xf32> to vector<32x1xf32>
      %cst_62 = arith.constant 3.200000e+01 : f32
      %169 = vector.broadcast %cst_62 : f32 to vector<32x1xf32>
      %170 = arith.divf %168, %169 : vector<32x1xf32>
      %171 = vector.broadcast %170 : vector<32x1xf32> to vector<32x32xf32>
      %172 = arith.subf %164, %171 : vector<32x32xf32>
      %173 = arith.mulf %172, %172 : vector<32x32xf32>
      %cst_63 = arith.constant dense<0.000000e+00> : vector<32xf32>
      %174 = vector.multi_reduction <add>, %173, %cst_63 [1] : vector<32x32xf32> to vector<32xf32>
      %175 = vector.shape_cast %174 : vector<32xf32> to vector<32x1xf32>
      %cst_64 = arith.constant 3.200000e+01 : f32
      %176 = vector.broadcast %cst_64 : f32 to vector<32x1xf32>
      %177 = arith.divf %175, %176 : vector<32x1xf32>
      %178 = vector.broadcast %170 : vector<32x1xf32> to vector<32x32xf32>
      %179 = arith.subf %164, %178 : vector<32x32xf32>
      %cst_65 = arith.constant 9.99999974E-6 : f32
      %180 = vector.broadcast %cst_65 : f32 to vector<32x1xf32>
      %181 = arith.addf %177, %180 : vector<32x1xf32>
      %182 = math.rsqrt %181 : vector<32x1xf32>
      %183 = vector.broadcast %182 : vector<32x1xf32> to vector<32x32xf32>
      %184 = arith.mulf %179, %183 : vector<32x32xf32>
      %185 = vector.broadcast %165 : vector<1x32xf32> to vector<32x32xf32>
      %186 = arith.mulf %184, %185 : vector<32x32xf32>
      %187 = vector.broadcast %166 : vector<1x32xf32> to vector<32x32xf32>
      %188 = arith.addf %186, %187 : vector<32x32xf32>
      %189 = vector.shape_cast %188 : vector<32x32xf32> to vector<2x16x32xf32>
      %c0_66 = arith.constant 0 : index
      %c0_67 = arith.constant 0 : index
      %190 = vector.load %arg3[%c0_66, %c0_67] : memref<16x32xf32, #tpu.memory_space<vmem>>, vector<16x32xf32>
      %191 = vector.shape_cast %190 : vector<16x32xf32> to vector<1x16x32xf32>
      %192 = vector.broadcast %191 : vector<1x16x32xf32> to vector<2x16x32xf32>
      %193 = arith.addf %189, %192 : vector<2x16x32xf32>
      %c0_68 = arith.constant 0 : index
      %c0_69 = arith.constant 0 : index
      %c0_70 = arith.constant 0 : index
      %194 = vector.load %arg14[%c0_68, %c0_69, %c0_70] : memref<2x16x32xf32, #tpu.memory_space<vmem>>, vector<2x16x32xf32>
      tpu.vector_store %arg14[%c0_68, %c0_69, %c0_70], %193 {strides = array<i32>} : memref<2x16x32xf32, #tpu.memory_space<vmem>>, vector<2x16x32xf32>,
    } else {
    }
    %c0_2 = arith.constant 0 : index
    %c0_3 = arith.constant 0 : index
    %c0_4 = arith.constant 0 : index
    %4 = vector.load %arg14[%c0_2, %c0_3, %c0_4] : memref<2x16x32xf32, #tpu.memory_space<vmem>>, vector<2x16x32xf32>
    %c0_5 = arith.constant 0 : index
    %c0_6 = arith.constant 0 : index
    %c0_7 = arith.constant 0 : index
    %5 = vector.load %arg7[%c0_5, %c0_6, %c0_7] : memref<1x8x32xf32, #tpu.memory_space<vmem>>, vector<1x8x32xf32>
    %6 = vector.shape_cast %5 : vector<1x8x32xf32> to vector<8x32xf32>
    %7 = vector.extract_strided_slice %6 {offsets = [0, 0], sizes = [1, 32], strides = [1, 1]} : vector<8x32xf32> to vector<1x32xf32>
    %8 = vector.extract_strided_slice %6 {offsets = [1, 0], sizes = [1, 32], strides = [1, 1]} : vector<8x32xf32> to vector<1x32xf32>
    %c0_8 = arith.constant 0 : index
    %c0_9 = arith.constant 0 : index
    %c0_10 = arith.constant 0 : index
    %9 = vector.load %arg9[%c0_8, %c0_9, %c0_10] : memref<1x32x96xbf16, #tpu.memory_space<vmem>>, vector<1x32x96xbf16>
    %10 = vector.shape_cast %9 : vector<1x32x96xbf16> to vector<32x96xbf16>
    %c0_11 = arith.constant 0 : index
    %c0_12 = arith.constant 0 : index
    %c0_13 = arith.constant 0 : index
    %11 = vector.load %arg10[%c0_11, %c0_12, %c0_13] : memref<1x32x32xbf16, #tpu.memory_space<vmem>>, vector<1x32x32xbf16>
    %12 = vector.shape_cast %11 : vector<1x32x32xbf16> to vector<32x32xbf16>
    %cst = arith.constant dense<0.000000e+00> : vector<2x16xf32>
    %13 = vector.multi_reduction <add>, %4, %cst [2] : vector<2x16x32xf32> to vector<2x16xf32>
    %14 = vector.shape_cast %13 : vector<2x16xf32> to vector<2x16x1xf32>
    %cst_14 = arith.constant 3.200000e+01 : f32
    %15 = vector.broadcast %cst_14 : f32 to vector<2x16x1xf32>
    %16 = arith.divf %14, %15 : vector<2x16x1xf32>
    %17 = vector.broadcast %16 : vector<2x16x1xf32> to vector<2x16x32xf32>
    %18 = arith.subf %4, %17 : vector<2x16x32xf32>
    %19 = arith.mulf %18, %18 : vector<2x16x32xf32>
    %cst_15 = arith.constant dense<0.000000e+00> : vector<2x16xf32>
    %20 = vector.multi_reduction <add>, %19, %cst_15 [2] : vector<2x16x32xf32> to vector<2x16xf32>
    %21 = vector.shape_cast %20 : vector<2x16xf32> to vector<2x16x1xf32>
    %cst_16 = arith.constant 3.200000e+01 : f32
    %22 = vector.broadcast %cst_16 : f32 to vector<2x16x1xf32>
    %23 = arith.divf %21, %22 : vector<2x16x1xf32>
    %24 = vector.broadcast %16 : vector<2x16x1xf32> to vector<2x16x32xf32>
    %25 = arith.subf %4, %24 : vector<2x16x32xf32>
    %cst_17 = arith.constant 9.99999974E-6 : f32
    %26 = vector.broadcast %cst_17 : f32 to vector<2x16x1xf32>
    %27 = arith.addf %23, %26 : vector<2x16x1xf32>
    %28 = math.rsqrt %27 : vector<2x16x1xf32>
    %29 = vector.broadcast %28 : vector<2x16x1xf32> to vector<2x16x32xf32>
    %30 = arith.mulf %25, %29 : vector<2x16x32xf32>
    %31 = vector.shape_cast %7 : vector<1x32xf32> to vector<1x1x32xf32>
    %32 = vector.broadcast %31 : vector<1x1x32xf32> to vector<2x16x32xf32>
    %33 = arith.mulf %30, %32 : vector<2x16x32xf32>
    %34 = vector.shape_cast %8 : vector<1x32xf32> to vector<1x1x32xf32>
    %35 = vector.broadcast %34 : vector<1x1x32xf32> to vector<2x16x32xf32>
    %36 = arith.addf %33, %35 : vector<2x16x32xf32>
    %37 = vector.shape_cast %36 : vector<2x16x32xf32> to vector<32x32xf32>
    %38 = arith.truncf %37 : vector<32x32xf32> to vector<32x32xbf16>
    %cst_18 = arith.constant dense<0.000000e+00> : vector<32x96xf32>
    %39 = tpu.matmul %38, %10, %cst_18 {dimension_numbers = #tpu.dot_dimension_numbers<[1], [0], [0], [1], [0, 0, 1, 1], [], []>} : vector<32x32xbf16>, vector<32x96xbf16>, vector<32x96xf32> -> vector<32x96xf32>
    %40 = arith.truncf %39 : vector<32x96xf32> to vector<32x96xbf16>
    %41 = vector.shape_cast %40 : vector<32x96xbf16> to vector<2x16x6x16xbf16>
    %42 = tpu.transpose %41, [0, 2, 1, 3] : vector<2x16x6x16xbf16> -> vector<2x6x16x16xbf16>
    %43 = vector.extract_strided_slice %42 {offsets = [0, 0, 0, 0], sizes = [2, 2, 16, 16], strides = [1, 1, 1, 1]} : vector<2x6x16x16xbf16> to vector<2x2x16x16xbf16>
    %44 = vector.shape_cast %43 : vector<2x2x16x16xbf16> to vector<4x16x16xbf16>
    %45 = vector.extract_strided_slice %42 {offsets = [0, 2, 0, 0], sizes = [2, 2, 16, 16], strides = [1, 1, 1, 1]} : vector<2x6x16x16xbf16> to vector<2x2x16x16xbf16>
    %46 = vector.shape_cast %45 : vector<2x2x16x16xbf16> to vector<4x16x16xbf16>
    %47 = vector.extract_strided_slice %42 {offsets = [0, 4, 0, 0], sizes = [2, 2, 16, 16], strides = [1, 1, 1, 1]} : vector<2x6x16x16xbf16> to vector<2x2x16x16xbf16>
    %48 = vector.shape_cast %47 : vector<2x2x16x16xbf16> to vector<4x16x16xbf16>
    %cst_19 = arith.constant dense<0.000000e+00> : vector<4x16x16xf32>
    %49 = tpu.matmul %44, %46, %cst_19 {dimension_numbers = #tpu.dot_dimension_numbers<[2], [2], [1], [1], [0, 0, 0, 1, 1, 1], [0], [0]>} : vector<4x16x16xbf16>, vector<4x16x16xbf16>, vector<4x16x16xf32> -> vector<4x16x16xf32>
    %cst_20 = arith.constant dense<0xFF800000> : vector<4x16xf32>
    %50 = vector.multi_reduction <maximumf>, %49, %cst_20 [2] : vector<4x16x16xf32> to vector<4x16xf32>
    %51 = vector.shape_cast %50 : vector<4x16xf32> to vector<4x16x1xf32>
    %52 = vector.broadcast %51 : vector<4x16x1xf32> to vector<4x16x16xf32>
    %53 = arith.subf %49, %52 : vector<4x16x16xf32>
    %54 = math.exp %53 : vector<4x16x16xf32>
    %cst_21 = arith.constant dense<0.000000e+00> : vector<4x16xf32>
    %55 = vector.multi_reduction <add>, %54, %cst_21 [2] : vector<4x16x16xf32> to vector<4x16xf32>
    %56 = vector.shape_cast %55 : vector<4x16xf32> to vector<4x16x1xf32>
    %57 = tpu.reciprocal %56 {approx = true} : vector<4x16x1xf32> -> vector<4x16x1xf32>
    %58 = vector.broadcast %57 : vector<4x16x1xf32> to vector<4x16x16xf32>
    %59 = arith.mulf %54, %58 : vector<4x16x16xf32>
    %60 = arith.truncf %59 : vector<4x16x16xf32> to vector<4x16x16xbf16>
    %cst_22 = arith.constant dense<0.000000e+00> : vector<4x16x16xf32>
    %61 = tpu.matmul %60, %48, %cst_22 {dimension_numbers = #tpu.dot_dimension_numbers<[2], [1], [1], [2], [0, 0, 0, 1, 1, 2], [0], [0]>} : vector<4x16x16xbf16>, vector<4x16x16xbf16>, vector<4x16x16xf32> -> vector<4x16x16xf32>
    %62 = arith.truncf %61 : vector<4x16x16xf32> to vector<4x16x16xbf16>
    %63 = vector.shape_cast %62 : vector<4x16x16xbf16> to vector<2x2x16x16xbf16>
    %64 = tpu.transpose %63, [0, 2, 1, 3] : vector<2x2x16x16xbf16> -> vector<2x16x2x16xbf16>
    %65 = vector.shape_cast %64 : vector<2x16x2x16xbf16> to vector<32x32xbf16>
    %cst_23 = arith.constant dense<0.000000e+00> : vector<32x32xf32>
    %66 = tpu.matmul %65, %12, %cst_23 {dimension_numbers = #tpu.dot_dimension_numbers<[1], [0], [0], [1], [0, 0, 1, 1], [], []>} : vector<32x32xbf16>, vector<32x32xbf16>, vector<32x32xf32> -> vector<32x32xf32>
    %67 = vector.shape_cast %66 : vector<32x32xf32> to vector<2x16x32xf32>
    %68 = arith.addf %4, %67 : vector<2x16x32xf32>
    %69 = vector.extract_strided_slice %6 {offsets = [2, 0], sizes = [1, 32], strides = [1, 1]} : vector<8x32xf32> to vector<1x32xf32>
    %70 = vector.extract_strided_slice %6 {offsets = [3, 0], sizes = [1, 32], strides = [1, 1]} : vector<8x32xf32> to vector<1x32xf32>
    %c0_24 = arith.constant 0 : index
    %c0_25 = arith.constant 0 : index
    %c0_26 = arith.constant 0 : index
    %71 = vector.load %arg11[%c0_24, %c0_25, %c0_26] : memref<1x32x64xbf16, #tpu.memory_space<vmem>>, vector<1x32x64xbf16>
    %72 = vector.shape_cast %71 : vector<1x32x64xbf16> to vector<32x64xbf16>
    %c0_27 = arith.constant 0 : index
    %c0_28 = arith.constant 0 : index
    %c0_29 = arith.constant 0 : index
    %73 = vector.load %arg8[%c0_27, %c0_28, %c0_29] : memref<1x1x64xf32, #tpu.memory_space<vmem>>, vector<1x1x64xf32>
    %74 = vector.shape_cast %73 : vector<1x1x64xf32> to vector<1x64xf32>
    %c0_30 = arith.constant 0 : index
    %c0_31 = arith.constant 0 : index
    %c0_32 = arith.constant 0 : index
    %75 = vector.load %arg12[%c0_30, %c0_31, %c0_32] : memref<1x64x32xbf16, #tpu.memory_space<vmem>>, vector<1x64x32xbf16>
    %76 = vector.shape_cast %75 : vector<1x64x32xbf16> to vector<64x32xbf16>
    %77 = vector.extract_strided_slice %6 {offsets = [4, 0], sizes = [1, 32], strides = [1, 1]} : vector<8x32xf32> to vector<1x32xf32>
    %cst_33 = arith.constant dense<0.000000e+00> : vector<2x16xf32>
    %78 = vector.multi_reduction <add>, %68, %cst_33 [2] : vector<2x16x32xf32> to vector<2x16xf32>
    %79 = vector.shape_cast %78 : vector<2x16xf32> to vector<2x16x1xf32>
    %cst_34 = arith.constant 3.200000e+01 : f32
    %80 = vector.broadcast %cst_34 : f32 to vector<2x16x1xf32>
    %81 = arith.divf %79, %80 : vector<2x16x1xf32>
    %82 = vector.broadcast %81 : vector<2x16x1xf32> to vector<2x16x32xf32>
    %83 = arith.subf %68, %82 : vector<2x16x32xf32>
    %84 = arith.mulf %83, %83 : vector<2x16x32xf32>
    %cst_35 = arith.constant dense<0.000000e+00> : vector<2x16xf32>
    %85 = vector.multi_reduction <add>, %84, %cst_35 [2] : vector<2x16x32xf32> to vector<2x16xf32>
    %86 = vector.shape_cast %85 : vector<2x16xf32> to vector<2x16x1xf32>
    %cst_36 = arith.constant 3.200000e+01 : f32
    %87 = vector.broadcast %cst_36 : f32 to vector<2x16x1xf32>
    %88 = arith.divf %86, %87 : vector<2x16x1xf32>
    %89 = vector.broadcast %81 : vector<2x16x1xf32> to vector<2x16x32xf32>
    %90 = arith.subf %68, %89 : vector<2x16x32xf32>
    %cst_37 = arith.constant 9.99999974E-6 : f32
    %91 = vector.broadcast %cst_37 : f32 to vector<2x16x1xf32>
    %92 = arith.addf %88, %91 : vector<2x16x1xf32>
    %93 = math.rsqrt %92 : vector<2x16x1xf32>
    %94 = vector.broadcast %93 : vector<2x16x1xf32> to vector<2x16x32xf32>
    %95 = arith.mulf %90, %94 : vector<2x16x32xf32>
    %96 = vector.shape_cast %69 : vector<1x32xf32> to vector<1x1x32xf32>
    %97 = vector.broadcast %96 : vector<1x1x32xf32> to vector<2x16x32xf32>
    %98 = arith.mulf %95, %97 : vector<2x16x32xf32>
    %99 = vector.shape_cast %70 : vector<1x32xf32> to vector<1x1x32xf32>
    %100 = vector.broadcast %99 : vector<1x1x32xf32> to vector<2x16x32xf32>
    %101 = arith.addf %98, %100 : vector<2x16x32xf32>
    %102 = vector.shape_cast %101 : vector<2x16x32xf32> to vector<32x32xf32>
    %103 = arith.truncf %102 : vector<32x32xf32> to vector<32x32xbf16>
    %cst_38 = arith.constant dense<0.000000e+00> : vector<32x64xf32>
    %104 = tpu.matmul %103, %72, %cst_38 {dimension_numbers = #tpu.dot_dimension_numbers<[1], [0], [0], [1], [0, 0, 1, 1], [], []>} : vector<32x32xbf16>, vector<32x64xbf16>, vector<32x64xf32> -> vector<32x64xf32>
    %105 = vector.broadcast %74 : vector<1x64xf32> to vector<32x64xf32>
    %106 = arith.addf %104, %105 : vector<32x64xf32>
    %cst_39 = arith.constant 5.000000e-01 : f32
    %107 = vector.broadcast %cst_39 : f32 to vector<32x64xf32>
    %108 = arith.mulf %107, %106 : vector<32x64xf32>
    %cst_40 = arith.constant 4.471500e-02 : f32
    %109 = vector.broadcast %cst_40 : f32 to vector<32x64xf32>
    %110 = arith.mulf %109, %106 : vector<32x64xf32>
    %111 = arith.mulf %110, %106 : vector<32x64xf32>
    %112 = arith.mulf %111, %106 : vector<32x64xf32>
    %113 = arith.addf %106, %112 : vector<32x64xf32>
    %cst_41 = arith.constant 0.797884583 : f32
    %114 = vector.broadcast %cst_41 : f32 to vector<32x64xf32>
    %115 = arith.mulf %114, %113 : vector<32x64xf32>
    %116 = math.tanh %115 : vector<32x64xf32>
    %cst_42 = arith.constant 1.000000e+00 : f32
    %117 = vector.broadcast %cst_42 : f32 to vector<32x64xf32>
    %118 = arith.addf %117, %116 : vector<32x64xf32>
    %119 = arith.mulf %108, %118 : vector<32x64xf32>
    %120 = arith.truncf %119 : vector<32x64xf32> to vector<32x64xbf16>
    %cst_43 = arith.constant dense<0.000000e+00> : vector<32x32xf32>
    %121 = tpu.matmul %120, %76, %cst_43 {dimension_numbers = #tpu.dot_dimension_numbers<[1], [0], [0], [1], [0, 0, 1, 1], [], []>} : vector<32x64xbf16>, vector<64x32xbf16>, vector<32x32xf32> -> vector<32x32xf32>
    %122 = vector.broadcast %77 : vector<1x32xf32> to vector<32x32xf32>
    %123 = arith.addf %121, %122 : vector<32x32xf32>
    %124 = vector.shape_cast %123 : vector<32x32xf32> to vector<2x16x32xf32>
    %125 = arith.addf %68, %124 : vector<2x16x32xf32>
    %c0_44 = arith.constant 0 : index
    %c0_45 = arith.constant 0 : index
    %c0_46 = arith.constant 0 : index
    %126 = vector.load %arg14[%c0_44, %c0_45, %c0_46] : memref<2x16x32xf32, #tpu.memory_space<vmem>>, vector<2x16x32xf32>
    tpu.vector_store %arg14[%c0_44, %c0_45, %c0_46], %125 {strides = array<i32>} : memref<2x16x32xf32, #tpu.memory_space<vmem>>, vector<2x16x32xf32>,
    %c1_i32 = arith.constant 1 : i32
    %127 = arith.cmpi eq, %arg1, %c1_i32 : i32
    %128 = arith.extui %127 : i1 to i32
    %c0_i32_47 = arith.constant 0 : i32
    %129 = arith.cmpi ne, %128, %c0_i32_47 : i32
    scf.if %129 {
      %130 = vector.extract_strided_slice %0 {offsets = [3, 0], sizes = [1, 32], strides = [1, 1]} : vector<8x32xf32> to vector<1x32xf32>
      %131 = vector.extract_strided_slice %0 {offsets = [4, 0], sizes = [1, 32], strides = [1, 1]} : vector<8x32xf32> to vector<1x32xf32>
      %cst_48 = arith.constant dense<0.000000e+00> : vector<2x16xf32>
      %132 = vector.multi_reduction <add>, %125, %cst_48 [2] : vector<2x16x32xf32> to vector<2x16xf32>
      %133 = vector.shape_cast %132 : vector<2x16xf32> to vector<2x16x1xf32>
      %cst_49 = arith.constant 3.200000e+01 : f32
      %134 = vector.broadcast %cst_49 : f32 to vector<2x16x1xf32>
      %135 = arith.divf %133, %134 : vector<2x16x1xf32>
      %136 = vector.broadcast %135 : vector<2x16x1xf32> to vector<2x16x32xf32>
      %137 = arith.subf %125, %136 : vector<2x16x32xf32>
      %138 = arith.mulf %137, %137 : vector<2x16x32xf32>
      %cst_50 = arith.constant dense<0.000000e+00> : vector<2x16xf32>
      %139 = vector.multi_reduction <add>, %138, %cst_50 [2] : vector<2x16x32xf32> to vector<2x16xf32>
      %140 = vector.shape_cast %139 : vector<2x16xf32> to vector<2x16x1xf32>
      %cst_51 = arith.constant 3.200000e+01 : f32
      %141 = vector.broadcast %cst_51 : f32 to vector<2x16x1xf32>
      %142 = arith.divf %140, %141 : vector<2x16x1xf32>
      %143 = vector.broadcast %135 : vector<2x16x1xf32> to vector<2x16x32xf32>
      %144 = arith.subf %125, %143 : vector<2x16x32xf32>
      %cst_52 = arith.constant 9.99999974E-6 : f32
      %145 = vector.broadcast %cst_52 : f32 to vector<2x16x1xf32>
      %146 = arith.addf %142, %145 : vector<2x16x1xf32>
      %147 = math.rsqrt %146 : vector<2x16x1xf32>
      %148 = vector.broadcast %147 : vector<2x16x1xf32> to vector<2x16x32xf32>
      %149 = arith.mulf %144, %148 : vector<2x16x32xf32>
      %150 = vector.shape_cast %130 : vector<1x32xf32> to vector<1x1x32xf32>
      %151 = vector.broadcast %150 : vector<1x1x32xf32> to vector<2x16x32xf32>
      %152 = arith.mulf %149, %151 : vector<2x16x32xf32>
      %153 = vector.shape_cast %131 : vector<1x32xf32> to vector<1x1x32xf32>
      %154 = vector.broadcast %153 : vector<1x1x32xf32> to vector<2x16x32xf32>
      %155 = arith.addf %152, %154 : vector<2x16x32xf32>
      %cst_53 = arith.constant dense<0.000000e+00> : vector<2x32xf32>
      %156 = vector.multi_reduction <add>, %155, %cst_53 [1] : vector<2x16x32xf32> to vector<2x32xf32>
      %157 = vector.shape_cast %156 : vector<2x32xf32> to vector<2x1x32xf32>
      %cst_54 = arith.constant 1.600000e+01 : f32
      %158 = vector.broadcast %cst_54 : f32 to vector<2x1x32xf32>
      %159 = arith.divf %157, %158 : vector<2x1x32xf32>
      %c0_55 = arith.constant 0 : index
      %c0_56 = arith.constant 0 : index
      %c0_57 = arith.constant 0 : index
      %160 = vector.load %arg13[%c0_55, %c0_56, %c0_57] : memref<2x1x32xf32, #tpu.memory_space<vmem>>, vector<2x1x32xf32>
      tpu.vector_store %arg13[%c0_55, %c0_56, %c0_57], %159 {strides = array<i32>} : memref<2x1x32xf32, #tpu.memory_space<vmem>>, vector<2x1x32xf32>,
    } else {
    }
    return
  }
  func.func @transform_0(%arg0: i32, %arg1: i32) -> (i32, i32, i32) {
    %c0_i32 = arith.constant 0 : i32
    %c0_i32_0 = arith.constant 0 : i32
    %c0_i32_1 = arith.constant 0 : i32
    return %arg0, %c0_i32, %c0_i32_0 : i32, i32, i32
  }
  func.func @transform_1(%arg0: i32, %arg1: i32) -> (i32, i32) {
    %c0_i32 = arith.constant 0 : i32
    %c0_i32_0 = arith.constant 0 : i32
    %c0_i32_1 = arith.constant 0 : i32
    return %c0_i32, %c0_i32_0 : i32, i32
  }
  func.func @transform_2(%arg0: i32, %arg1: i32) -> (i32, i32) {
    %c0_i32 = arith.constant 0 : i32
    %c0_i32_0 = arith.constant 0 : i32
    %c0_i32_1 = arith.constant 0 : i32
    return %c0_i32, %c0_i32_0 : i32, i32
  }
  func.func @transform_3(%arg0: i32, %arg1: i32) -> (i32, i32) {
    %c0_i32 = arith.constant 0 : i32
    %c0_i32_0 = arith.constant 0 : i32
    %c0_i32_1 = arith.constant 0 : i32
    return %c0_i32, %c0_i32_0 : i32, i32
  }
  func.func @transform_4(%arg0: i32, %arg1: i32) -> (i32, i32) {
    %c0_i32 = arith.constant 0 : i32
    %c0_i32_0 = arith.constant 0 : i32
    %c0_i32_1 = arith.constant 0 : i32
    return %c0_i32, %c0_i32_0 : i32, i32
  }
  func.func @transform_5(%arg0: i32, %arg1: i32) -> (i32, i32, i32) {
    %c0_i32 = arith.constant 0 : i32
    %c0_i32_0 = arith.constant 0 : i32
    %c0_i32_1 = arith.constant 0 : i32
    return %arg1, %c0_i32, %c0_i32_0 : i32, i32, i32
  }
  func.func @transform_6(%arg0: i32, %arg1: i32) -> (i32, i32, i32) {
    %c0_i32 = arith.constant 0 : i32
    %c0_i32_0 = arith.constant 0 : i32
    %c0_i32_1 = arith.constant 0 : i32
    return %arg1, %c0_i32, %c0_i32_0 : i32, i32, i32
  }
  func.func @transform_7(%arg0: i32, %arg1: i32) -> (i32, i32, i32) {
    %c0_i32 = arith.constant 0 : i32
    %c0_i32_0 = arith.constant 0 : i32
    %c0_i32_1 = arith.constant 0 : i32
    return %arg1, %c0_i32, %c0_i32_0 : i32, i32, i32
  }
  func.func @transform_8(%arg0: i32, %arg1: i32) -> (i32, i32, i32) {
    %c0_i32 = arith.constant 0 : i32
    %c0_i32_0 = arith.constant 0 : i32
    %c0_i32_1 = arith.constant 0 : i32
    return %arg1, %c0_i32, %c0_i32_0 : i32, i32, i32
  }
  func.func @transform_9(%arg0: i32, %arg1: i32) -> (i32, i32, i32) {
    %c0_i32 = arith.constant 0 : i32
    %c0_i32_0 = arith.constant 0 : i32
    %c0_i32_1 = arith.constant 0 : i32
    return %arg1, %c0_i32, %c0_i32_0 : i32, i32, i32
  }
  func.func @transform_10(%arg0: i32, %arg1: i32) -> (i32, i32, i32) {
    %c0_i32 = arith.constant 0 : i32
    %c0_i32_0 = arith.constant 0 : i32
    %c0_i32_1 = arith.constant 0 : i32
    return %arg1, %c0_i32, %c0_i32_0 : i32, i32, i32
  }
  func.func @transform_11(%arg0: i32, %arg1: i32) -> (i32, i32, i32) {
    %c0_i32 = arith.constant 0 : i32
    %c0_i32_0 = arith.constant 0 : i32
    %c0_i32_1 = arith.constant 0 : i32
    return %arg0, %c0_i32, %c0_i32_0 : i32, i32, i32
  }
}

</mosaic_0001>

<bundles_post_ra>
// kernel: simple_vit_forward.1
= control target key start
LH: loop header
LB: loop body
LE: loop exit
PB: predicated region body
PF: predicated region fallthrough
CT: control target
= control target key end

     0   :  { %s3968_s0 = inlined_call_operand.vmem [shape: f32[2,16,16], index: 0, kind: input, shape index: {}]   ;;  %s3969_s1 = inlined_call_operand.vmem [shape: f32[16,32], index: 1, kind: input, shape index: {}]   ;;  %s3970_s2 = inlined_call_operand.vmem [shape: f32[2,16], index: 2, kind: input, shape index: {}]   ;;  %s3971_s3 = inlined_call_operand.vmem [shape: bf16[16,32], index: 3, kind: input, shape index: {}]   ;;  %s3972_s4 = inlined_call_operand.vmem [shape: f32[8,32], index: 4, kind: input, shape index: {}]   ;;  %s3973_s5 = inlined_call_operand.vmem [shape: f32[2,8,32], index: 5, kind: input, shape index: {}]   ;;  %s3974_s6 = inlined_call_operand.vmem [shape: f32[2,1,64], index: 6, kind: input, shape index: {}]   ;;  %s3975_s7 = inlined_call_operand.vmem [shape: bf16[2,32,96], index: 7, kind: input, shape index: {}]   ;;  %s3976_s8 = inlined_call_operand.vmem [shape: bf16[2,32,32], index: 8, kind: input, shape index: {}]   ;;  %s3977_s9 = inlined_call_operand.vmem [shape: bf16[2,32,64], index: 9, kind: input, shape index: {}]   ;;  %s3978_s10 = inlined_call_operand.vmem [shape: bf16[2,64,32], index: 10, kind: input, shape index: {}]   ;;  %s3979_s11 = inlined_call_operand.hbm [shape: f32[2,1,32], index: 11, kind: output, shape index: {}]  }
   0x1   :  { %3980 = sst [smem:[#allocation7_spill]] %s3972_s4 }
   0x2   :  { %16 = vsyncpa [#allocation4], 0  ;;  %s3480_s17 = smov 0   ;;  %s3482_s18 = smov 0  }
   0x3   :  { %s3484_s19 = smov 0  }
   0x4 LB: > { %s31_s21 = sadd.s32 1, %s3401_s18  ;;  %p3023_p1 = scmp.ge.s32.totalorder %s3405_s19, 1  ;;  %s3405_s19 = sphi %s3484_s19, %s22_s19   ;;  %s3401_s18 = sphi %s3482_s18, %s3987_s18   ;;  %s3397_s17 = sphi %s3480_s17, %s3986_s17  }
   0x5   : > { %p32_p0 = scmp.ge.s32.totalorder %s31_s21, 2  ;;  %p409_p2 = scmp.lt.s32.totalorder %s3405_s19, 3 }
   0x7   : > { %s3989_s21 = smov (%p32_p0, %s31_s21), 0  ;;  %p410_p3 = pnand %p3023_p1, %p409_p2 }
   0x8   : > { %3981 = sst [smem:[#allocation6_spill]] %s3989_s21  ;;  %p479_p4 = scmp.lt.s32.totalorder (!%p410_p3), %s3397_s17, 1 }
   0x9   : > { %413 = sbr.rel (%p410_p3) target bundleno = 3718 (0xe86), region = 64  ;;  %s3982_s4 = sld [smem:[#allocation7_spill]] (!%p410_p3) }
   0xa   : > { %p3033_p5 = scmp.ne.s32.totalorder (!%p410_p3), %s3397_s17, 0 }
   0xe   : > { %s3508_s24 = scalar_select %p479_p4, %s3397_s17, 1 }
   0xf   : > { %v3505_v0 = vld [vmem:[%s3982_s4] sm:$0xff] }
  0x10   : > { %s3024_s25 = sshll.u32 %s3508_s24, 3  ;;  %s485_s28 = scalar_lea.vmem %s3974_s6, %s3508_s24 }
  0x11   : > { %s3518_s12 = scalar_lea.vmem %s3973_s5, %s3024_s25  ;;  %s3085_s13 = sshll.u32 %s3508_s24, 4 }
  0x12   : > { %s3524_s16 = scalar_lea.vmem %s3975_s7, %s3085_s13  ;;  %s3529_s20 = scalar_lea.vmem %s3976_s8, %s3085_s13 }
  0x13   : > { %s3534_s26 = scalar_lea.vmem %s3977_s9, %s3085_s13  ;;  %s3088_s27 = sshll.u32 %s3508_s24, 5 }
  0x14   : > { %s3540_s30 = scalar_lea.vmem %s3978_s10, %s3088_s27  ;;  %512 = sbr.rel (%p3033_p5) target bundleno = 860 (0x35c), region = 68 }
  0x19   : > { %v513_v1 = vld [vmem:[%s3968_s0] sm:$0xff]  ;;  %vm518_vm0 = vcmask 130048   ;;  %v515_v2 = vld [vmem:[%s3968_s0 + $0x10] sm:$0xff]  ;;  %v514_v3 = vld [vmem:[%s3968_s0 + $0x8] sm:$0xff]  ;;  %v572_v39 = vlaneseq  ;;  %vm657_vm1 = vcmask 261120  }
  0x1a   : > { %v519_v4 = vsel %vm518_vm0, %v513_v1, 0.0  ;;  %v525_v5 = vsel %vm518_vm0, %v515_v2, 0.0  ;;  %v516_v6 = vld [vmem:[%s3968_s0 + $0x18] sm:$0xff]  ;;  %v522_v7 = vsel %vm518_vm0, %v514_v3, 0.0  ;;  %v3259_v29 = vld [vmem:[%s3971_s3] sm:$0xff]  }
  0x1b   : > { %520 = vadd.xlane.f32.xlu0 %v519_v4  ;;  %526 = vadd.xlane.f32.xlu1 %v525_v5  ;;  %v528_v8 = vsel %vm518_vm0, %v516_v6, 0.0  ;;  %v3566_v43 = vshrl.u32 %v572_v39, 7  ;;  %v517_v45 = vld [vmem:[%s3970_s2] sm:$0x3] }
  0x1c   : > { %3126 = vmatprep.subr.bf16.mxu0 %v3259_v29 }
  0x1d   : > { %3127 = vmatpush3.bf16.msra.mxu0 %v3259_v29  ;;  %v574_v44 = vsub.s32 0, %v3566_v43  ;;  %v582_v49 = vsub.s32 1, %v3566_v43 }
  0x1f   : > { %523 = vadd.xlane.f32.xlu0 %v522_v7  ;;  %529 = vadd.xlane.f32.xlu1 %v528_v8  ;;  %v575_v48 = vrot.slane %v517_v45, %v574_v44  ;;  %v583_v54 = vrot.slane %v517_v45, %v582_v49  ;;  %v595_v5 = vrot.slane %v3505_v0, %v574_v44 }
  0xa4   : > { %v521_v9 = vpop.xlane.xlu0 %520  ;;  %v527_v10 = vpop.xlane.xlu1 %526 }
  0xa5   : > { %v532_v11 = vmul.f32 0.0625, %v521_v9  ;;  %v534_v12 = vmul.f32 0.0625, %v527_v10 }
  0xa7   : > { %v536_v13 = vsub.f32 %v513_v1, %v532_v11  ;;  %v538_v14 = vsub.f32 %v515_v2, %v534_v12 }
  0xa8   : > { %v524_v15 = vpop.xlane.xlu0 %523  ;;  %v530_v16 = vpop.xlane.xlu1 %529 }
  0xa9   : > { %v533_v17 = vmul.f32 0.0625, %v524_v15  ;;  %v535_v18 = vmul.f32 0.0625, %v530_v16  ;;  %v540_v19 = vmul.f32 %v536_v13, %v536_v13  ;;  %v542_v20 = vmul.f32 %v538_v14, %v538_v14 }
  0xab   : > { %v537_v21 = vsub.f32 %v514_v3, %v533_v17  ;;  %v539_v22 = vsub.f32 %v516_v6, %v535_v18  ;;  %v544_v23 = vsel %vm518_vm0, %v540_v19, 0.0  ;;  %v550_v24 = vsel %vm518_vm0, %v542_v20, 0.0 }
  0xac   : > { %545 = vadd.xlane.f32.xlu0 %v544_v23 }
  0xad   : > { %v541_v25 = vmul.f32 %v537_v21, %v537_v21  ;;  %v543_v26 = vmul.f32 %v539_v22, %v539_v22 }
  0xaf   : > { %v547_v27 = vsel %vm518_vm0, %v541_v25, 0.0  ;;  %v553_v28 = vsel %vm518_vm0, %v543_v26, 0.0 }
  0xb0   : > { %551 = vadd.xlane.f32.xlu0 %v550_v24  ;;  %548 = vadd.xlane.f32.xlu1 %v547_v27 }
  0xb4   : > { %554 = vadd.xlane.f32.xlu1 %v553_v28 }
 0x135   : > { %v546_v30 = vpop.xlane.xlu0 %545 }
 0x136   : > { %v556_v31 = vmul.f32 0.0625, %v546_v30 }
 0x138   : > { %v560_v32 = vadd.f32 1e-05, %v556_v31 }
 0x139   : > { %v549_v33 = vpop.xlane.xlu1 %548  ;;  %v552_v34 = vpop.xlane.xlu0 %551 }
 0x13a   : > { %3260 = vrsqrt.f32 %v560_v32  ;;  %v557_v35 = vmul.f32 0.0625, %v549_v33  ;;  %v558_v36 = vmul.f32 0.0625, %v552_v34 }
 0x13c   : > { %v561_v37 = vadd.f32 1e-05, %v557_v35  ;;  %v562_v38 = vadd.f32 1e-05, %v558_v36 }
 0x13d   : > { %v555_v40 = vpop.xlane.xlu1 %554 }
 0x13e   : > { %3262 = vrsqrt.f32 %v561_v37  ;;  %v559_v41 = vmul.f32 0.0625, %v555_v40 }
 0x13f   : > { %3264 = vrsqrt.f32 %v562_v38 }
 0x140   : > { %v563_v42 = vadd.f32 1e-05, %v559_v41 }
 0x142   : > { %3266 = vrsqrt.f32 %v563_v42 }
 0x147   : > { %v3261_v46 = vpop.eup %3260 }
 0x148   : > { %v568_v47 = vmul.f32 %v3261_v46, %v536_v13 }
 0x14a   : > { %v576_v53 = vmul.f32 %v575_v48, %v568_v47 }
 0x14b   : > { %v3263_v50 = vpop.eup %3262 }
 0x14c   : > { %v3265_v51 = vpop.eup %3264  ;;  %v569_v52 = vmul.f32 %v3263_v50, %v537_v21  ;;  %v584_v58 = vadd.f32 %v583_v54, %v576_v53 }
 0x14d   : > { %v570_v55 = vmul.f32 %v3265_v51, %v538_v14  ;;  %v721_v51 = vsub.s32 2, %v3566_v43  ;;  %v728_v43 = vld [vmem:[%s3969_s1 + $0x8] sm:$0xff] }
 0x14e   : > { %v577_v56 = vmul.f32 %v575_v48, %v569_v52  ;;  %v714_v52 = vrot.slane %v3505_v0, %v582_v49 }
 0x14f   : > { %v3267_v57 = vpop.eup %3266  ;;  %v578_v61 = vmul.f32 %v575_v48, %v570_v55 }
 0x150   : > { %v585_v59 = vadd.f32 %v583_v54, %v577_v56  ;;  %v571_v60 = vmul.f32 %v3267_v57, %v539_v22 }
 0x151   : > { %v586_v1 = vadd.f32 %v583_v54, %v578_v61 }
 0x152   : > { %v590_v62 = vpack.c.bf16 %v585_v59, %v584_v58  ;;  %v579_v63 = vmul.f32 %v575_v48, %v571_v60  ;;  %v727_v58 = vld [vmem:[%s3969_s1] sm:$0xff] }
 0x154   : > { %3128 = vmatprep.mubr.msk.bf16.mxu0 %vm518_vm0, %v590_v62  ;;  %v587_v2 = vadd.f32 %v583_v54, %v579_v63  ;;  %v722_v54 = vrot.slane %v3505_v0, %v721_v51 }
 0x156   : > { %v591_v3 = vpack.c.bf16 %v587_v2, %v586_v1 }
 0x158   : > { %3129 = vmatmul.mubr.msk.bf16.vlgmr.msra.gmra.mxu0 %vm518_vm0, %v591_v3 }
 0x218   : > { %v3130_v4 = vpop.f32.mrf.mxu0 }
 0x219   : > { %v651_v9 = vadd.f32 %v3130_v4, %v595_v5 }
 0x21a   : > { %v642_v6 = vpop.f32.mrf.mxu0 }
 0x21b   : > { %v643_v7 = vadd.f32 %v642_v6, %v595_v5  ;;  %v664_v15 = vsel %vm657_vm1, %v651_v9, 0.0 }
 0x21c   : > { %v3131_v8 = vpop.f32.mrf.mxu0 }
 0x21d   : > { %v658_v10 = vsel %vm657_vm1, %v643_v7, 0.0  ;;  %v654_v13 = vadd.f32 %v3131_v8, %v595_v5 }
 0x21e   : > { %v645_v11 = vpop.f32.mrf.mxu0  ;;  %659 = vadd.xlane.f32.xlu0 %v658_v10 }
 0x21f   : > { %v646_v12 = vadd.f32 %v645_v11, %v595_v5  ;;  %v667_v16 = vsel %vm657_vm1, %v654_v13, 0.0 }
 0x221   : > { %v661_v14 = vsel %vm657_vm1, %v646_v12, 0.0 }
 0x222   : > { %662 = vadd.xlane.f32.xlu1 %v661_v14  ;;  %665 = vadd.xlane.f32.xlu0 %v664_v15 }
 0x226   : > { %668 = vadd.xlane.f32.xlu1 %v667_v16 }
 0x2a7   : > { %v660_v17 = vpop.xlane.xlu0 %659 }
 0x2a8   : > { %v671_v18 = vmul.f32 0.03125, %v660_v17 }
 0x2aa   : > { %v675_v19 = vsub.f32 %v643_v7, %v671_v18 }
 0x2ab   : > { %v663_v20 = vpop.xlane.xlu1 %662  ;;  %v666_v21 = vpop.xlane.xlu0 %665 }
 0x2ac   : > { %v672_v22 = vmul.f32 0.03125, %v663_v20  ;;  %v673_v23 = vmul.f32 0.03125, %v666_v21  ;;  %v679_v24 = vmul.f32 %v675_v19, %v675_v19 }
 0x2ae   : > { %v676_v25 = vsub.f32 %v646_v12, %v672_v22  ;;  %v677_v26 = vsub.f32 %v651_v9, %v673_v23  ;;  %v683_v27 = vsel %vm657_vm1, %v679_v24, 0.0 }
 0x2af   : > { %v669_v28 = vpop.xlane.xlu1 %668  ;;  %684 = vadd.xlane.f32.xlu0 %v683_v27 }
 0x2b0   : > { %v674_v29 = vmul.f32 0.03125, %v669_v28  ;;  %v680_v30 = vmul.f32 %v676_v25, %v676_v25  ;;  %v681_v31 = vmul.f32 %v677_v26, %v677_v26 }
 0x2b2   : > { %v678_v32 = vsub.f32 %v654_v13, %v674_v29  ;;  %v686_v33 = vsel %vm657_vm1, %v680_v30, 0.0  ;;  %v689_v34 = vsel %vm657_vm1, %v681_v31, 0.0 }
 0x2b3   : > { %687 = vadd.xlane.f32.xlu1 %v686_v33  ;;  %690 = vadd.xlane.f32.xlu0 %v689_v34 }
 0x2b4   : > { %v682_v35 = vmul.f32 %v678_v32, %v678_v32 }
 0x2b6   : > { %v692_v36 = vsel %vm657_vm1, %v682_v35, 0.0 }
 0x2b7   : > { %693 = vadd.xlane.f32.xlu1 %v692_v36 }
 0x338   : > { %v685_v37 = vpop.xlane.xlu0 %684 }
 0x339   : > { %v695_v38 = vmul.f32 0.03125, %v685_v37 }
 0x33b   : > { %v699_v39 = vadd.f32 1e-05, %v695_v38 }
 0x33c   : > { %v688_v40 = vpop.xlane.xlu1 %687  ;;  %v691_v41 = vpop.xlane.xlu0 %690 }
 0x33d   : > { %3268 = vrsqrt.f32 %v699_v39  ;;  %v696_v42 = vmul.f32 0.03125, %v688_v40  ;;  %v697_v44 = vmul.f32 0.03125, %v691_v41 }
 0x33f   : > { %v700_v45 = vadd.f32 1e-05, %v696_v42  ;;  %v701_v46 = vadd.f32 1e-05, %v697_v44 }
 0x340   : > { %v694_v47 = vpop.xlane.xlu1 %693 }
 0x341   : > { %3270 = vrsqrt.f32 %v700_v45  ;;  %v698_v48 = vmul.f32 0.03125, %v694_v47 }
 0x342   : > { %3272 = vrsqrt.f32 %v701_v46 }
 0x343   : > { %v702_v50 = vadd.f32 1e-05, %v698_v48 }
 0x345   : > { %3274 = vrsqrt.f32 %v702_v50 }
 0x34a   : > { %v3269_v53 = vpop.eup %3268 }
 0x34b   : > { %v707_v55 = vmul.f32 %v3269_v53, %v675_v19 }
 0x34d   : > { %v715_v56 = vmul.f32 %v714_v52, %v707_v55 }
 0x34e   : > { %v3271_v57 = vpop.eup %3270 }
 0x34f   : > { %v3273_v59 = vpop.eup %3272  ;;  %v723_v60 = vadd.f32 %v722_v54, %v715_v56  ;;  %v708_v61 = vmul.f32 %v3271_v57, %v676_v25 }
 0x350   : > { %v709_v62 = vmul.f32 %v3273_v59, %v677_v26 }
 0x351   : > { %v729_v63 = vadd.f32 %v727_v58, %v723_v60  ;;  %v716_v1 = vmul.f32 %v714_v52, %v708_v61 }
 0x352   : > { %v3275_v2 = vpop.eup %3274  ;;  %v717_v49 = vmul.f32 %v714_v52, %v709_v62 }
 0x353   : > { %733 = vst.msk [vmem:[#allocation2] sm:$0xff] %vm657_vm1, %v729_v63  ;;  %v724_v3 = vadd.f32 %v722_v54, %v716_v1  ;;  %v710_v4 = vmul.f32 %v3275_v2, %v678_v32 }
 0x354   : > { %v725_v5 = vadd.f32 %v722_v54, %v717_v49 }
 0x355   : > { %v730_v6 = vadd.f32 %v728_v43, %v724_v3  ;;  %v718_v7 = vmul.f32 %v714_v52, %v710_v4 }
 0x356   : > { %v731_v8 = vadd.f32 %v727_v58, %v725_v5 }
 0x357   : > { %734 = vst.msk [vmem:[#allocation2 + $0x8] sm:$0xff] %vm657_vm1, %v730_v6  ;;  %v726_v9 = vadd.f32 %v722_v54, %v718_v7 }
 0x358   : > { %735 = vst.msk [vmem:[#allocation2 + $0x10] sm:$0xff] %vm657_vm1, %v731_v8 }
 0x359   : > { %v732_v10 = vadd.f32 %v728_v43, %v726_v9 }
 0x35b   : > { %736 = vst.msk [vmem:[#allocation2 + $0x18] sm:$0xff] %vm657_vm1, %v732_v10 }
 0x35c PF: > { %v737_v11 = vld [vmem:[#allocation2] sm:$0xff]  ;;  %vm750_vm2 = vcmask 261120   ;;  %v3276_v39 = vld [vmem:[%s3524_s16 + $0x8] sm:$0xff]   ;;  %v804_v52 = vlaneseq  ;;  %s3408_s13 = smov 96   ;;  %s3409_s27 = smov 48   ;;  %vm3413_vm3 = vmmov 0  }
 0x35d   : > { %v751_v14 = vsel %vm750_vm2, %v737_v11, 0.0  ;;  %v3277_v40 = vld [vmem:[%s3524_s16] sm:$0xff]   ;;  %3132 = vmatprep.subr.bf16.mxu0 %v3276_v39  ;;  %s3407_s16 = smov 112   ;;  %s3410_s29 = smov 80   ;;  %vm1543_vm4 = vcmask 130048   ;;  %vm2725_vm5 = vcmask 523264  }
 0x35e   : > { %v738_v13 = vld [vmem:[#allocation2 + $0x8] sm:$0xff]  ;;  %752 = vadd.xlane.f32.xlu0 %v751_v14  ;;  %3133 = vmatpush3.bf16.msra.mxu0 %v3276_v39  ;;  %v3611_v56 = vshrl.u32 %v804_v52, 7  ;;  %v741_v58 = vld [vmem:[%s3518_s12] sm:$0xff]  ;;  %s3411_s25 = smov 64   ;;  %p3080_p6 = scmp.ne.s32.totalorder %s3397_s17, 1 }
 0x35f   : > { %v739_v12 = vld [vmem:[#allocation2 + $0x10] sm:$0xff]  ;;  %v754_v17 = vsel %vm750_vm2, %v738_v13, 0.0  ;;  %3134 = vmatprep.subr.bf16.mxu0 %v3277_v40 }
 0x360   : > { %v757_v15 = vsel %vm750_vm2, %v739_v12, 0.0  ;;  %v806_v57 = vsub.s32 0, %v3611_v56  ;;  %v814_v62 = vsub.s32 1, %v3611_v56 }
 0x361   : > { %758 = vadd.xlane.f32.xlu1 %v757_v15 }
 0x362   : > { %v740_v16 = vld [vmem:[#allocation2 + $0x18] sm:$0xff]  ;;  %755 = vadd.xlane.f32.xlu0 %v754_v17  ;;  %3135 = vmatpush3.bf16.msra.mxu0 %v3277_v40  ;;  %v807_v61 = vrot.slane %v741_v58, %v806_v57  ;;  %v815_v49 = vrot.slane %v741_v58, %v814_v62 }
 0x363   : > { %v760_v18 = vsel %vm750_vm2, %v740_v16, 0.0 }
 0x365   : > { %761 = vadd.xlane.f32.xlu1 %v760_v18 }
 0x3e7   : > { %v753_v19 = vpop.xlane.xlu0 %752 }
 0x3e8   : > { %v764_v21 = vmul.f32 0.03125, %v753_v19 }
 0x3ea   : > { %v759_v20 = vpop.xlane.xlu1 %758  ;;  %v768_v23 = vsub.f32 %v737_v11, %v764_v21  ;;  %v3412_v21 = vmov 0.0  }
 0x3eb   : > { %v766_v22 = vmul.f32 0.03125, %v759_v20  ;;  %v756_v25 = vpop.xlane.xlu0 %755  ;;  %3140 = vmatprep.subr.bf16.mxu1 %v3412_v21  ;;  %3146 = vmatprep.subr.bf16.mxu0 %v3412_v21 }
 0x3ec   : > { %v765_v27 = vmul.f32 0.03125, %v756_v25  ;;  %v772_v29 = vmul.f32 %v768_v23, %v768_v23  ;;  %3142 = vmatprep.mubr.msk.bf16.mxu1 %vm3413_vm3, %v3412_v21 }
 0x3ed   : > { %v770_v24 = vsub.f32 %v739_v12, %v766_v22 }
 0x3ee   : > { %v762_v26 = vpop.xlane.xlu1 %761  ;;  %v769_v31 = vsub.f32 %v738_v13, %v765_v27  ;;  %v776_v33 = vsel %vm750_vm2, %v772_v29, 0.0  ;;  %v3415_v27 = vmov 1934713408  }
 0x3ef   : > { %v767_v28 = vmul.f32 0.03125, %v762_v26  ;;  %v774_v30 = vmul.f32 %v770_v24, %v770_v24  ;;  %777 = vadd.xlane.f32.xlu0 %v776_v33 }
 0x3f0   : > { %v773_v35 = vmul.f32 %v769_v31, %v769_v31 }
 0x3f1   : > { %v771_v32 = vsub.f32 %v740_v16, %v767_v28  ;;  %v782_v34 = vsel %vm750_vm2, %v774_v30, 0.0  ;;  %v1001_v28 = vunpack.c.l.s4 %v3415_v27 }
 0x3f2   : > { %v779_v37 = vsel %vm750_vm2, %v773_v35, 0.0 }
 0x3f3   : > { %v775_v36 = vmul.f32 %v771_v32, %v771_v32  ;;  %783 = vadd.xlane.f32.xlu0 %v782_v34  ;;  %780 = vadd.xlane.f32.xlu1 %v779_v37 }
 0x3f5   : > { %v785_v38 = vsel %vm750_vm2, %v775_v36, 0.0  ;;  %v1002_v36 = vunpack.c.0.s8 %v1001_v28 }
 0x3f7   : > { %786 = vadd.xlane.f32.xlu1 %v785_v38 }
 0x478   : > { %v778_v41 = vpop.xlane.xlu0 %777 }
 0x479   : > { %v788_v42 = vmul.f32 0.03125, %v778_v41 }
 0x47b   : > { %v792_v44 = vadd.f32 1e-05, %v788_v42 }
 0x47c   : > { %v781_v45 = vpop.xlane.xlu1 %780  ;;  %v784_v46 = vpop.xlane.xlu0 %783 }
 0x47d   : > { %3286 = vrsqrt.f32 %v792_v44  ;;  %v789_v47 = vmul.f32 0.03125, %v781_v45  ;;  %v790_v48 = vmul.f32 0.03125, %v784_v46 }
 0x47f   : > { %v793_v50 = vadd.f32 1e-05, %v789_v47  ;;  %v794_v51 = vadd.f32 1e-05, %v790_v48 }
 0x480   : > { %v787_v53 = vpop.xlane.xlu1 %786 }
 0x481   : > { %3288 = vrsqrt.f32 %v793_v50  ;;  %v791_v54 = vmul.f32 0.03125, %v787_v53 }
 0x482   : > { %3290 = vrsqrt.f32 %v794_v51  ;;  %v3642_v51 = vsub.s32 %v1002_v36, %v3611_v56 }
 0x483   : > { %v795_v55 = vadd.f32 1e-05, %v791_v54 }
 0x485   : > { %3292 = vrsqrt.f32 %v795_v55 }
 0x48a   : > { %v3287_v59 = vpop.eup %3286 }
 0x48b   : > { %v800_v60 = vmul.f32 %v3287_v59, %v768_v23 }
 0x48d   : > { %v808_v43 = vmul.f32 %v807_v61, %v800_v60 }
 0x48e   : > { %v3289_v63 = vpop.eup %3288 }
 0x48f   : > { %v3291_v1 = vpop.eup %3290  ;;  %v801_v2 = vmul.f32 %v3289_v63, %v769_v31  ;;  %v816_v6 = vadd.f32 %v815_v49, %v808_v43 }
 0x490   : > { %v802_v3 = vmul.f32 %v3291_v1, %v770_v24  ;;  %v3414_v24 = vmov 1983009808  }
 0x491   : > { %v809_v4 = vmul.f32 %v807_v61, %v801_v2  ;;  %v970_v25 = vunpack.c.l.s4 %v3414_v24 }
 0x492   : > { %v3293_v5 = vpop.eup %3292  ;;  %v810_v9 = vmul.f32 %v807_v61, %v802_v3 }
 0x493   : > { %v817_v7 = vadd.f32 %v815_v49, %v809_v4  ;;  %v803_v8 = vmul.f32 %v3293_v5, %v771_v32  ;;  %v971_v29 = vunpack.c.0.s8 %v970_v25  ;;  %v3416_v32 = vmov 0  }
 0x494   : > { %v818_v12 = vadd.f32 %v815_v49, %v810_v9  ;;  %v3635_v33 = vpack.i.b16 %v3416_v32, %v3416_v32 }
 0x495   : > { %v820_v10 = vpack.c.bf16 %v817_v7, %v816_v6  ;;  %v811_v11 = vmul.f32 %v807_v61, %v803_v8  ;;  %v3638_v37 = vsub.s32 %v971_v29, %v3611_v56 }
 0x497   : > { %3136 = vmatprep.mubr.msk.bf16.mxu0 %vm750_vm2, %v820_v10  ;;  %v819_v13 = vadd.f32 %v815_v49, %v811_v11 }
 0x499   : > { %v821_v14 = vpack.c.bf16 %v819_v13, %v818_v12 }
 0x49b   : > { %3137 = vmatmul.mubr.msk.bf16.vlgmr.msra.gmra.mxu0 %vm750_vm2, %v821_v14 }
 0x49c   : > { %3148 = vmatprep.mubr.msk.bf16.mxu0 %vm3413_vm3, %v3412_v21 }
 0x55b   : > { %v3138_v15 = vpop.f32.mrf.mxu0 }
 0x55d   : > { %v874_v16 = vpop.f32.mrf.mxu0 }
 0x55f   : > { %v3139_v17 = vpop.f32.mrf.mxu0 }
 0x560   : > { %v3618_v18 = vpack.c.bf16 %v3139_v17, %v3138_v15 }
 0x561   : > { %v877_v19 = vpop.f32.mrf.mxu0 }
 0x562   : > { %v889_v20 = vpack.c.bf16 %v877_v19, %v874_v16  ;;  %895 = vrot.lane.b32.xlu1 %v3618_v18, %s3407_s16  ;;  %v947_v52 = vshrl.u32 %v3618_v18, 16 }
 0x564   : > { %893 = vrot.lane.b32.xlu0 %v889_v20, %s3407_s16  ;;  %v917_v45 = vshrl.u32 %v889_v20, 16 }
 0x566   : > { %897 = vrot.lane.b32.xlu1 %v889_v20, %s3408_s13 }
 0x568   : > { %909 = vrot.lane.b32.xlu0 %v889_v20, %s3409_s27 }
 0x56a   : > { %901 = vrot.lane.b32.xlu1 %v889_v20, %s3410_s29 }
 0x56c   : > { %899 = vrot.lane.b32.xlu0 %v3618_v18, %s3408_s13 }
 0x56e   : > { %905 = vrot.lane.b32.xlu1 %v889_v20, %s3411_s25 }
 0x570   : > { %907 = vrot.lane.b32.xlu0 %v3618_v18, %s3411_s25 }
 0x572   : > { %903 = vrot.lane.b32.xlu1 %v3618_v18, %s3410_s29 }
 0x576   : > { %911 = vrot.lane.b32.xlu1 %v3618_v18, %s3409_s27 }
 0x5d4   : > { %v3631_v22 = vpop.permute.xlu1 %895 }
 0x5d5   : > { %v948_v55 = vshrl.u32 %v3631_v22, 16  ;;  %v945_v29 = vpack.i.b16 %v3631_v22, %v3618_v18 }
 0x5d6   : > { %v894_v23 = vpop.permute.xlu0 %893 }
 0x5d7   : > { %v918_v38 = vshrl.u32 %v894_v23, 16  ;;  %v915_v41 = vpack.i.b16 %v894_v23, %v889_v20 }
 0x5d8   : > { %v898_v26 = vpop.permute.xlu1 %897 }
 0x5d9   : > { %v925_v39 = vshrl.u32 %v898_v26, 16  ;;  %v919_v57 = vpack.i.b16 %v918_v38, %v917_v45 }
 0x5da   : > { %v910_v30 = vpop.permute.xlu0 %909 }
 0x5db   : > { %v934_v46 = vshrl.u32 %v910_v30, 16 }
 0x5dc   : > { %v902_v31 = vpop.permute.xlu1 %901 }
 0x5dd   : > { %v923_v34 = vpack.i.b16 %v902_v31, %v898_v26  ;;  %v926_v35 = vshrl.u32 %v902_v31, 16 }
 0x5de   : > { %v900_v48 = vpop.permute.xlu0 %899 }
 0x5df   : > { %v983_v42 = vcombine.high %v923_v34, %v3635_v33  ;;  %v927_v47 = vpack.i.b16 %v926_v35, %v925_v39  ;;  %v990_v58 = vrot.slane %v923_v34, %v3638_v37  ;;  %v955_v62 = vshrl.u32 %v900_v48, 16 }
 0x5e0   : > { %v906_v40 = vpop.permute.xlu1 %905  ;;  %v949_v35 = vpack.i.b16 %v948_v55, %v947_v52 }
 0x5e1   : > { %v931_v44 = vpack.i.b16 %v910_v30, %v906_v40  ;;  %v933_v50 = vshrl.u32 %v906_v40, 16  ;;  %v997_v61 = vrot.slane %v983_v42, %v3638_v37  ;;  %v1050_v2 = vcombine.high %v927_v47, %v3635_v33 }
 0x5e2   : > { %v1057_v8 = vrot.slane %v927_v47, %v3638_v37  ;;  %v908_v20 = vpop.permute.xlu0 %907 }
 0x5e3   : > { %v967_v53 = vcombine.low %v915_v41, %v931_v44  ;;  %v968_v54 = vcombine.high %v915_v41, %v931_v44  ;;  %v935_v59 = vpack.i.b16 %v934_v46, %v933_v50  ;;  %v1064_v16 = vrot.slane %v1050_v2, %v3638_v37 }
 0x5e4   : > { %v904_v60 = vpop.permute.xlu1 %903  ;;  %v963_v38 = vshrl.u32 %v908_v20, 16 }
 0x5e5   : > { %v975_v63 = vrot.slane %v967_v53, %v3638_v37  ;;  %v982_v1 = vrot.slane %v968_v54, %v3638_v37  ;;  %v1034_v43 = vcombine.low %v919_v57, %v935_v59  ;;  %v1035_v49 = vcombine.high %v919_v57, %v935_v59 }
 0x5e6   : > { %v956_v3 = vshrl.u32 %v904_v60, 16  ;;  %v953_v11 = vpack.i.b16 %v904_v60, %v900_v48 }
 0x5e7   : > { %v998_v4 = vcombine.low %v975_v63, %v990_v58  ;;  %v999_v5 = vcombine.high %v975_v63, %v990_v58  ;;  %v1014_v6 = vcombine.low %v982_v1, %v997_v61  ;;  %v1015_v7 = vcombine.high %v982_v1, %v997_v61 }
 0x5e8   : > { %v1042_v9 = vrot.slane %v1034_v43, %v3638_v37  ;;  %v1049_v10 = vrot.slane %v1035_v49, %v3638_v37  ;;  %v957_v23 = vpack.i.b16 %v956_v3, %v955_v62  ;;  %v912_v28 = vpop.permute.xlu1 %911  ;;  %v1117_v39 = vcombine.high %v953_v11, %v3635_v33 }
 0x5e9   : > { %v1006_v12 = vrot.slane %v998_v4, %v3642_v51  ;;  %v1013_v13 = vrot.slane %v999_v5, %v3642_v51  ;;  %v1022_v14 = vrot.slane %v1014_v6, %v3642_v51  ;;  %v1029_v15 = vrot.slane %v1015_v7, %v3642_v51 }
 0x5ea   : > { %v1065_v17 = vcombine.low %v1042_v9, %v1057_v8  ;;  %v1066_v19 = vcombine.high %v1042_v9, %v1057_v8  ;;  %v1081_v34 = vcombine.low %v1049_v10, %v1064_v16  ;;  %v1082_v36 = vcombine.high %v1049_v10, %v1064_v16 }
 0x5eb   : > { %v1235_v24 = vcombine.low %v1006_v12, %v1013_v13  ;;  %v3041_v25 = vcombine.high %v1006_v12, %v1013_v13  ;;  %v1251_v26 = vcombine.low %v1022_v14, %v1029_v15  ;;  %v3042_v27 = vcombine.high %v1022_v14, %v1029_v15 }
 0x5ec   : > { %v1073_v30 = vrot.slane %v1065_v17, %v3642_v51  ;;  %v1080_v31 = vrot.slane %v1066_v19, %v3642_v51  ;;  %v1184_v40 = vcombine.high %v957_v23, %v3635_v33  ;;  %v961_v41 = vpack.i.b16 %v912_v28, %v908_v20 }
 0x5ed   : > { %v964_v42 = vshrl.u32 %v912_v28, 16  ;;  %v3666_v44 = vrot.slane %v1235_v24, %v3638_v37  ;;  %v3669_v45 = vrot.slane %v3041_v25, %v3638_v37  ;;  %v3672_v18 = vrot.slane %v1251_v26, %v3638_v37 }
 0x5ee   : > { %v3675_v22 = vrot.slane %v3042_v27, %v3638_v37  ;;  %v1302_v46 = vcombine.low %v1073_v30, %v1080_v31  ;;  %v1089_v47 = vrot.slane %v1081_v34, %v3642_v51  ;;  %v1101_v50 = vcombine.low %v945_v29, %v961_v41 }
 0x5ef   : > { %v965_v48 = vpack.i.b16 %v964_v42, %v963_v38  ;;  %v1102_v52 = vcombine.high %v945_v29, %v961_v41  ;;  %v1096_v53 = vrot.slane %v1082_v36, %v3642_v51  ;;  %v1124_v54 = vrot.slane %v953_v11, %v3638_v37 }
 0x5f0   : > { %v1131_v55 = vrot.slane %v1117_v39, %v3638_v37  ;;  %v1191_v57 = vrot.slane %v957_v23, %v3638_v37  ;;  %v1109_v58 = vrot.slane %v1101_v50, %v3638_v37  ;;  %v1198_v62 = vrot.slane %v1184_v40, %v3638_v37 }
 0x5f1   : > { %v1116_v59 = vrot.slane %v1102_v52, %v3638_v37  ;;  %v1168_v60 = vcombine.low %v949_v35, %v965_v48  ;;  %v1169_v61 = vcombine.high %v949_v35, %v965_v48  ;;  %v1267_v63 = vcombine.low %v3666_v44, %v3669_v45 }
 0x5f2   : > { %v1283_v1 = vcombine.low %v3672_v18, %v3675_v22  ;;  %v3690_v2 = vrot.slane %v1302_v46, %v3638_v37  ;;  %v1132_v43 = vcombine.low %v1109_v58, %v1124_v54  ;;  %v1133_v49 = vcombine.high %v1109_v58, %v1124_v54 }
 0x5f3   : > { %v1148_v3 = vcombine.low %v1116_v59, %v1131_v55  ;;  %v1149_v4 = vcombine.high %v1116_v59, %v1131_v55  ;;  %v1176_v5 = vrot.slane %v1168_v60, %v3638_v37  ;;  %v1183_v6 = vrot.slane %v1169_v61, %v3638_v37 }
 0x5f4   : > { %v3043_v7 = vcombine.high %v1073_v30, %v1080_v31  ;;  %v1318_v8 = vcombine.low %v1089_v47, %v1096_v53  ;;  %v1140_v9 = vrot.slane %v1132_v43, %v3642_v51  ;;  %v1147_v10 = vrot.slane %v1133_v49, %v3642_v51 }
 0x5f5   : > { %v1156_v11 = vrot.slane %v1148_v3, %v3642_v51  ;;  %v1163_v12 = vrot.slane %v1149_v4, %v3642_v51  ;;  %v1199_v13 = vcombine.low %v1176_v5, %v1191_v57  ;;  %v1200_v14 = vcombine.high %v1176_v5, %v1191_v57 }
 0x5f6   : > { %v1215_v15 = vcombine.low %v1183_v6, %v1198_v62  ;;  %v1216_v16 = vcombine.high %v1183_v6, %v1198_v62  ;;  %v1369_v17 = vcombine.low %v1140_v9, %v1147_v10  ;;  %v3045_v19 = vcombine.high %v1140_v9, %v1147_v10 }
 0x5f7   : > { %v1385_v20 = vcombine.low %v1156_v11, %v1163_v12  ;;  %v3046_v23 = vcombine.high %v1156_v11, %v1163_v12  ;;  %v1207_v24 = vrot.slane %v1199_v13, %v3642_v51  ;;  %v1214_v25 = vrot.slane %v1200_v14, %v3642_v51 }
 0x5f8   : > { %v1223_v26 = vrot.slane %v1215_v15, %v3642_v51  ;;  %v1230_v27 = vrot.slane %v1216_v16, %v3642_v51  ;;  %v1317_v28 = vrot.slane %v3043_v7, %v3638_v37  ;;  %v1325_v29 = vrot.slane %v1318_v8, %v3638_v37 }
 0x5f9   : > { %v3044_v30 = vcombine.high %v1089_v47, %v1096_v53  ;;  %v1436_v31 = vcombine.low %v1207_v24, %v1214_v25  ;;  %v3047_v34 = vcombine.high %v1207_v24, %v1214_v25  ;;  %v1275_v36 = vrot.slane %v1267_v63, %v3642_v51 }
 0x5fa   : > { %v1452_v35 = vcombine.low %v1223_v26, %v1230_v27  ;;  %v3048_v38 = vcombine.high %v1223_v26, %v1230_v27  ;;  %v1291_v39 = vrot.slane %v1283_v1, %v3642_v51  ;;  %v1334_v41 = vcombine.low %v3690_v2, %v1317_v28 }
 0x5fb   : > { %v1333_v40 = vrot.slane %v3044_v30, %v3638_v37  ;;  %v1376_v42 = vrot.slane %v1369_v17, %v3638_v37  ;;  %v1384_v46 = vrot.slane %v3045_v19, %v3638_v37  ;;  %v1392_v48 = vrot.slane %v1385_v20, %v3638_v37 }
 0x5fc   : > { %v1400_v47 = vrot.slane %v3046_v23, %v3638_v37  ;;  %v1342_v50 = vrot.slane %v1334_v41, %v3642_v51  ;;  %v1443_v53 = vrot.slane %v1436_v31, %v3638_v37  ;;  %v1451_v57 = vrot.slane %v3047_v34, %v3638_v37 }
 0x5fd   : > { %v1350_v52 = vcombine.low %v1325_v29, %v1333_v40  ;;  %v1401_v54 = vcombine.low %v1376_v42, %v1384_v46  ;;  %v1459_v58 = vrot.slane %v1452_v35, %v3638_v37  ;;  %v1300_v59 = vcombine.high %v1275_v36, %v1291_v39 }
 0x5fe   : > { %v1417_v55 = vcombine.low %v1392_v48, %v1400_v47  ;;  %v1467_v61 = vrot.slane %v3048_v38, %v3638_v37  ;;  %v1468_v1 = vcombine.low %v1443_v53, %v1451_v57  ;;  %v1335_v9 = vcombine.high %v3690_v2, %v1317_v28 }
 0x5ff   : > { %v1358_v60 = vrot.slane %v1350_v52, %v3642_v51  ;;  %v1409_v62 = vrot.slane %v1401_v54, %v3642_v51  ;;  %v1512_v5 = vshrl.u32 %v1300_v59, 16  ;;  %v1268_v13 = vcombine.high %v3666_v44, %v3669_v45 }
 0x600   : > { %v1425_v63 = vrot.slane %v1417_v55, %v3642_v51  ;;  %v1484_v49 = vcombine.low %v1459_v58, %v1467_v61  ;;  %v1476_v3 = vrot.slane %v1468_v1, %v3642_v51  ;;  %v1299_v14 = vcombine.low %v1275_v36, %v1291_v39 }
 0x601   : > { %v1367_v43 = vcombine.high %v1342_v50, %v1358_v60  ;;  %v1366_v10 = vcombine.low %v1342_v50, %v1358_v60  ;;  %v1351_v15 = vcombine.high %v1325_v29, %v1333_v40  ;;  %v1402_v19 = vcombine.high %v1376_v42, %v1384_v46 }
 0x602   : > { %v1434_v7 = vcombine.high %v1409_v62, %v1425_v63  ;;  %v1492_v8 = vrot.slane %v1484_v49, %v3642_v51  ;;  %v1418_v20 = vcombine.high %v1392_v48, %v1400_v47  ;;  %v1469_v23 = vcombine.high %v1443_v53, %v1451_v57 }
 0x603   : > { %v1511_v4 = vpack.i.b16 %v1367_v43, %v1300_v59  ;;  %v1513_v6 = vshrl.u32 %v1367_v43, 16  ;;  %v1284_v2 = vcombine.high %v3672_v18, %v3675_v22  ;;  %v1507_v27 = vshrl.u32 %v1366_v10, 16 }
 0x604   : > { %v1501_v16 = vcombine.high %v1476_v3, %v1492_v8  ;;  %v1532_v25 = vshrl.u32 %v1434_v7, 16  ;;  %v1349_v44 = vrot.slane %v1335_v9, %v3642_v51  ;;  %v1416_v45 = vrot.slane %v1402_v19, %v3642_v51 }
 0x605   : > { %v1548_v11 = vsel %vm1543_vm4, %v1511_v4, 0  ;;  %v1514_v12 = vpack.i.b16 %v1513_v6, %v1512_v5  ;;  %v1432_v28 = vrot.slane %v1418_v20, %v3642_v51  ;;  %v1365_v30 = vrot.slane %v1351_v15, %v3642_v51 }
 0x606   : > { %3141 = vmatpush3.bf16.xpose.msra.mxu1 %v1548_v11  ;;  %v1531_v24 = vpack.i.b16 %v1501_v16, %v1434_v7  ;;  %v1533_v26 = vshrl.u32 %v1501_v16, 16  ;;  %v1483_v31 = vrot.slane %v1469_v23, %v3642_v51  ;;  %v1485_v34 = vcombine.high %v1459_v58, %v1467_v61 }
 0x607   : > { %v1595_v17 = vsel %vm1543_vm4, %v1514_v12, 0  ;;  %3152 = vmatprep.subr.bf16.mxu1 %v3412_v21  ;;  %v1506_v18 = vshrl.u32 %v1299_v14, 16  ;;  %v1505_v22 = vpack.i.b16 %v1366_v10, %v1299_v14  ;;  %v3737_v36 = vcombine.low %v1416_v45, %v1432_v28 }
 0x608   : > { %3147 = vmatpush3.bf16.xpose.msra.mxu0 %v1595_v17  ;;  %v1534_v29 = vpack.i.b16 %v1533_v26, %v1532_v25  ;;  %v1642_v35 = vsel %vm1543_vm4, %v1531_v24, 0  ;;  %v1282_v38 = vrot.slane %v1268_v13, %v3642_v51  ;;  %v1298_v39 = vrot.slane %v1284_v2, %v3642_v51 }
 0x609   : > { %3158 = vmatprep.subr.bf16.mxu0 %v3412_v21  ;;  %v1499_v40 = vrot.slane %v1485_v34, %v3642_v51  ;;  %v1500_v41 = vcombine.low %v1476_v3, %v1492_v8  ;;  %v1508_v42 = vpack.i.b16 %v1507_v27, %v1506_v18  ;;  %v1368_v48 = vcombine.low %v1349_v44, %v1365_v30 }
 0x60a   : > { %v1689_v46 = vsel %vm1543_vm4, %v1534_v29, 0  ;;  %v1433_v50 = vcombine.low %v1409_v62, %v1425_v63  ;;  %v1301_v52 = vcombine.low %v1282_v38, %v1298_v39  ;;  %v1539_v54 = vshrl.u32 %v3737_v36, 16 }
 0x60b   : > { %v3746_v47 = vcombine.low %v1483_v31, %v1499_v40  ;;  %v1527_v57 = vshrl.u32 %v1500_v41, 16  ;;  %v1520_v58 = vshrl.u32 %v1368_v48, 16 }
 0x60c   : > { %v1526_v60 = vshrl.u32 %v1433_v50, 16  ;;  %v1525_v61 = vpack.i.b16 %v1500_v41, %v1433_v50  ;;  %v1517_v62 = vpack.i.b16 %v1368_v48, %v1301_v52  ;;  %v1519_v63 = vshrl.u32 %v1301_v52, 16 }
 0x60d   : > { %3143 = vmatmul.mubr.msk.bf16.vlgmr.msra.gmra.mxu1 %vm1543_vm4, %v1505_v22  ;;  %v1537_v53 = vpack.i.b16 %v3746_v47, %v3737_v36  ;;  %v1540_v55 = vshrl.u32 %v3746_v47, 16 }
 0x60e   : > { %3153 = vmatpush3.bf16.xpose.msra.mxu1 %v1642_v35  ;;  %3154 = vmatprep.mubr.msk.bf16.mxu1 %vm3413_vm3, %v3412_v21  ;;  %v1528_v1 = vpack.i.b16 %v1527_v57, %v1526_v60  ;;  %v1521_v43 = vpack.i.b16 %v1520_v58, %v1519_v63 }
 0x60f   : > { %3149 = vmatmul.mubr.msk.bf16.vlgmr.msra.gmra.mxu0 %vm1543_vm4, %v1508_v42  ;;  %3164 = vmatprep.subr.bf16.mxu1 %v3412_v21  ;;  %v3757_v59 = vpack.i.b16 %v1540_v55, %v1539_v54 }
 0x610   : > { %3159 = vmatpush3.bf16.xpose.msra.mxu0 %v1689_v46  ;;  %3160 = vmatprep.mubr.msk.bf16.mxu0 %vm3413_vm3, %v3412_v21 }
 0x611   : > { %3170 = vmatprep.subr.bf16.mxu0 %v3412_v21 }
 0x615   : > { %3155 = vmatmul.mubr.msk.bf16.vlgmr.msra.gmra.mxu1 %vm1543_vm4, %v1525_v61 }
 0x616   : > { %3165 = vmatpush3.bf16.msra.mxu1 %v1517_v62  ;;  %3166 = vmatprep.mubr.msk.bf16.mxu1 %vm3413_vm3, %v3412_v21 }
 0x617   : > { %3161 = vmatmul.mubr.msk.bf16.vlgmr.msra.gmra.mxu0 %vm1543_vm4, %v1528_v1  ;;  %3176 = vmatprep.subr.bf16.mxu1 %v3412_v21 }
 0x618   : > { %3171 = vmatpush3.bf16.msra.mxu0 %v1521_v43  ;;  %3172 = vmatprep.mubr.msk.bf16.mxu0 %vm3413_vm3, %v3412_v21 }
 0x619   : > { %3182 = vmatprep.subr.bf16.mxu0 %v3412_v21 }
 0x6cd   : > { %v1584_v49 = vpop.f32.mrf.mxu1 }
 0x6ce   : > { %v1732_v3 = vsel %vm1543_vm4, %v1584_v49, -inf }
 0x6cf   : > { %v1631_v4 = vpop.f32.mrf.mxu0  ;;  %1733 = vmax.xlane.f32.xlu0 %v1732_v3  ;;  %v3144_v5 = vpop.f32.mrf.mxu1 }
 0x6d0   : > { %v1738_v8 = vsel %vm1543_vm4, %v1631_v4, -inf }
 0x6d1   : > { %v1587_v6 = vpop.f32.mrf.mxu1  ;;  %v3150_v7 = vpop.f32.mrf.mxu0 }
 0x6d2   : > { %v1735_v9 = vsel %vm1543_vm4, %v1587_v6, -inf }
 0x6d3   : > { %v1634_v10 = vpop.f32.mrf.mxu0  ;;  %1739 = vmax.xlane.f32.xlu0 %v1738_v8  ;;  %1736 = vmax.xlane.f32.xlu1 %v1735_v9  ;;  %v3145_v11 = vpop.f32.mrf.mxu1 }
 0x6d4   : > { %v1741_v14 = vsel %vm1543_vm4, %v1634_v10, -inf }
 0x6d5   : > { %v3151_v12 = vpop.f32.mrf.mxu0  ;;  %v1678_v13 = vpop.f32.mrf.mxu1 }
 0x6d6   : > { %v1744_v20 = vsel %vm1543_vm4, %v1678_v13, -inf }
 0x6d7   : > { %v1725_v15 = vpop.f32.mrf.mxu0  ;;  %1742 = vmax.xlane.f32.xlu0 %v1741_v14  ;;  %v3156_v16 = vpop.f32.mrf.mxu1 }
 0x6d8   : > { %v1750_v26 = vsel %vm1543_vm4, %v1725_v15, -inf }
 0x6d9   : > { %v1681_v17 = vpop.f32.mrf.mxu1  ;;  %v3162_v19 = vpop.f32.mrf.mxu0 }
 0x6da   : > { %v1747_v23 = vsel %vm1543_vm4, %v1681_v17, -inf }
 0x6db   : > { %v1728_v2 = vpop.f32.mrf.mxu0  ;;  %1745 = vmax.xlane.f32.xlu0 %v1744_v20  ;;  %1748 = vmax.xlane.f32.xlu1 %v1747_v23  ;;  %v3157_v24 = vpop.f32.mrf.mxu1 }
 0x6dc   : > { %v1753_v27 = vsel %vm1543_vm4, %v1728_v2, -inf }
 0x6dd   : > { %v3163_v25 = vpop.f32.mrf.mxu0 }
 0x6df   : > { %1751 = vmax.xlane.f32.xlu0 %v1750_v26  ;;  %1754 = vmax.xlane.f32.xlu1 %v1753_v27 }
 0x758   : > { %v1734_v44 = vpop.xlane.xlu0 %1733 }
 0x759   : > { %v1756_v45 = vsub.f32 %v1584_v49, %v1734_v44 }
 0x75b   : > { %v1764_v28 = vmul.f32 1.442695, %v1756_v45 }
 0x75c   : > { %v1740_v29 = vpop.xlane.xlu0 %1739  ;;  %v1737_v30 = vpop.xlane.xlu1 %1736 }
 0x75d   : > { %3294 = vpow2.f32 %v1764_v28  ;;  %v1758_v31 = vsub.f32 %v1631_v4, %v1740_v29  ;;  %v1757_v34 = vsub.f32 %v1587_v6, %v1737_v30 }
 0x75f   : > { %v1768_v18 = vmul.f32 1.442695, %v1758_v31  ;;  %v1766_v22 = vmul.f32 1.442695, %v1757_v34 }
 0x760   : > { %v1743_v35 = vpop.xlane.xlu0 %1742 }
 0x761   : > { %3296 = vpow2.f32 %v1768_v18  ;;  %v1759_v38 = vsub.f32 %v1634_v10, %v1743_v35 }
 0x762   : > { %3298 = vpow2.f32 %v1766_v22 }
 0x763   : > { %v1770_v39 = vmul.f32 1.442695, %v1759_v38 }
 0x764   : > { %v1746_v40 = vpop.xlane.xlu0 %1745  ;;  %v1749_v41 = vpop.xlane.xlu1 %1748 }
 0x765   : > { %3300 = vpow2.f32 %v1770_v39  ;;  %v1760_v42 = vsub.f32 %v1678_v13, %v1746_v40  ;;  %v1761_v46 = vsub.f32 %v1681_v17, %v1749_v41 }
 0x767   : > { %v1772_v48 = vmul.f32 1.442695, %v1760_v42  ;;  %v1774_v50 = vmul.f32 1.442695, %v1761_v46 }
 0x768   : > { %v1752_v52 = vpop.xlane.xlu0 %1751  ;;  %v1755_v54 = vpop.xlane.xlu1 %1754 }
 0x769   : > { %3302 = vpow2.f32 %v1772_v48  ;;  %v1762_v55 = vsub.f32 %v1725_v15, %v1752_v52  ;;  %v1763_v57 = vsub.f32 %v1728_v2, %v1755_v54 }
 0x76a   : > { %v3295_v58 = vpop.eup %3294  ;;  %3304 = vpow2.f32 %v1774_v50 }
 0x76b   : > { %v1776_v60 = vmul.f32 1.442695, %v1762_v55  ;;  %v1778_v61 = vmul.f32 1.442695, %v1763_v57  ;;  %v1780_v62 = vsel %vm1543_vm4, %v3295_v58, 0.0 }
 0x76c   : > { %1781 = vadd.xlane.f32.xlu0 %v1780_v62 }
 0x76d   : > { %3306 = vpow2.f32 %v1776_v60 }
 0x76e   : > { %v3297_v63 = vpop.eup %3296  ;;  %3308 = vpow2.f32 %v1778_v61 }
 0x76f   : > { %v3299_v1 = vpop.eup %3298  ;;  %v1786_v43 = vsel %vm1543_vm4, %v3297_v63, 0.0 }
 0x770   : > { %1787 = vadd.xlane.f32.xlu0 %v1786_v43  ;;  %v1783_v49 = vsel %vm1543_vm4, %v3299_v1, 0.0 }
 0x771   : > { %1784 = vadd.xlane.f32.xlu1 %v1783_v49 }
 0x772   : > { %v3301_v3 = vpop.eup %3300 }
 0x773   : > { %v1789_v4 = vsel %vm1543_vm4, %v3301_v3, 0.0 }
 0x775   : > { %1790 = vadd.xlane.f32.xlu1 %v1789_v4 }
 0x776   : > { %v3303_v5 = vpop.eup %3302 }
 0x777   : > { %v3305_v6 = vpop.eup %3304  ;;  %v1792_v7 = vsel %vm1543_vm4, %v3303_v5, 0.0 }
 0x778   : > { %1793 = vadd.xlane.f32.xlu0 %v1792_v7  ;;  %v1795_v8 = vsel %vm1543_vm4, %v3305_v6, 0.0 }
 0x779   : > { %1796 = vadd.xlane.f32.xlu1 %v1795_v8 }
 0x77a   : > { %v3307_v9 = vpop.eup %3306 }
 0x77b   : > { %v3309_v10 = vpop.eup %3308  ;;  %v1798_v11 = vsel %vm1543_vm4, %v3307_v9, 0.0 }
 0x77c   : > { %1799 = vadd.xlane.f32.xlu0 %v1798_v11  ;;  %v1801_v12 = vsel %vm1543_vm4, %v3309_v10, 0.0 }
 0x77d   : > { %1802 = vadd.xlane.f32.xlu1 %v1801_v12 }
 0x7f5   : > { %v1782_v13 = vpop.xlane.xlu0 %1781 }
 0x7f6   : > { %3310 = vrcp.f32 %v1782_v13 }
 0x7f9   : > { %v1788_v14 = vpop.xlane.xlu0 %1787 }
 0x7fa   : > { %v1785_v15 = vpop.xlane.xlu1 %1784 }
 0x7fb   : > { %3312 = vrcp.f32 %v1785_v15 }
 0x7fc   : > { %3314 = vrcp.f32 %v1788_v14 }
 0x7fe   : > { %v1791_v16 = vpop.xlane.xlu1 %1790 }
 0x7ff   : > { %3316 = vrcp.f32 %v1791_v16 }
 0x801   : > { %v1794_v17 = vpop.xlane.xlu0 %1793 }
 0x802   : > { %3318 = vrcp.f32 %v1794_v17  ;;  %v1797_v19 = vpop.xlane.xlu1 %1796 }
 0x803   : > { %3320 = vrcp.f32 %v1797_v19  ;;  %v3311_v23 = vpop.eup %3310 }
 0x804   : > { %v1812_v25 = vmul.f32 %v3311_v23, %v3295_v58 }
 0x805   : > { %v1800_v20 = vpop.xlane.xlu0 %1799 }
 0x806   : > { %3322 = vrcp.f32 %v1800_v20  ;;  %v1803_v2 = vpop.xlane.xlu1 %1802 }
 0x807   : > { %3324 = vrcp.f32 %v1803_v2 }
 0x808   : > { %v3313_v24 = vpop.eup %3312 }
 0x809   : > { %v1813_v26 = vmul.f32 %v3313_v24, %v3299_v1  ;;  %v3315_v27 = vpop.eup %3314 }
 0x80a   : > { %v1814_v28 = vmul.f32 %v3315_v27, %v3297_v63 }
 0x80b   : > { %v1820_v44 = vpack.c.bf16 %v1813_v26, %v1812_v25 }
 0x80c   : > { %v3317_v45 = vpop.eup %3316 }
 0x80d   : > { %3167 = vmatmul.mubr.msk.bf16.vlgmr.msra.gmra.mxu1 %vm1543_vm4, %v1820_v44  ;;  %v1815_v29 = vmul.f32 %v3317_v45, %v3301_v3 }
 0x80e   : > { %3177 = vmatpush3.bf16.msra.mxu1 %v1537_v53  ;;  %3178 = vmatprep.mubr.msk.bf16.mxu1 %vm3413_vm3, %v3412_v21 }
 0x80f   : > { %v3319_v30 = vpop.eup %3318  ;;  %v1821_v31 = vpack.c.bf16 %v1815_v29, %v1814_v28 }
 0x810   : > { %v3321_v34 = vpop.eup %3320  ;;  %v1816_v18 = vmul.f32 %v3319_v30, %v3303_v5 }
 0x811   : > { %3173 = vmatmul.mubr.msk.bf16.vlgmr.msra.gmra.mxu0 %vm1543_vm4, %v1821_v31  ;;  %v1817_v22 = vmul.f32 %v3321_v34, %v3305_v6 }
 0x812   : > { %3183 = vmatpush3.bf16.msra.mxu0 %v3757_v59  ;;  %3184 = vmatprep.mubr.msk.bf16.mxu0 %vm3413_vm3, %v3412_v21 }
 0x813   : > { %v3323_v35 = vpop.eup %3322  ;;  %v1822_v38 = vpack.c.bf16 %v1817_v22, %v1816_v18 }
 0x814   : > { %v3325_v39 = vpop.eup %3324  ;;  %v1818_v36 = vmul.f32 %v3323_v35, %v3307_v9 }
 0x815   : > { %3179 = vmatmul.mubr.msk.bf16.vlgmr.msra.gmra.mxu1 %vm1543_vm4, %v1822_v38  ;;  %v1819_v47 = vmul.f32 %v3325_v39, %v3309_v10 }
 0x817   : > { %v1823_v53 = vpack.c.bf16 %v1819_v47, %v1818_v36 }
 0x819   : > { %3185 = vmatmul.mubr.msk.bf16.vlgmr.msra.gmra.mxu0 %vm1543_vm4, %v1823_v53 }
 0x8cd   : > { %v1861_v40 = vpop.f32.mrf.mxu1 }
 0x8cf   : > { %v3168_v41 = vpop.f32.mrf.mxu1 }
 0x8d1   : > { %v1864_v42 = vpop.f32.mrf.mxu1  ;;  %v1905_v46 = vpop.f32.mrf.mxu0 }
 0x8d2   : > { %v2000_v59 = vpack.c.bf16 %v1864_v42, %v1861_v40 }
 0x8d3   : > { %v3169_v48 = vpop.f32.mrf.mxu1  ;;  %v3174_v50 = vpop.f32.mrf.mxu0 }
 0x8d4   : > { %v2008_v58 = vshrl.u32 %v2000_v59, 16 }
 0x8d5   : > { %v1908_v52 = vpop.f32.mrf.mxu0  ;;  %v1949_v54 = vpop.f32.mrf.mxu1 }
 0x8d6   : > { %v2001_v21 = vpack.c.bf16 %v1908_v52, %v1905_v46 }
 0x8d7   : > { %v3175_v55 = vpop.f32.mrf.mxu0  ;;  %v3180_v57 = vpop.f32.mrf.mxu1 }
 0x8d8   : > { %v2006_v60 = vpack.i.b16 %v2001_v21, %v2000_v59  ;;  %v2009_v61 = vshrl.u32 %v2001_v21, 16 }
 0x8d9   : > { %v1952_v62 = vpop.f32.mrf.mxu1  ;;  %v1993_v63 = vpop.f32.mrf.mxu0 }
 0x8da   : > { %v2010_v1 = vpack.i.b16 %v2009_v61, %v2008_v58  ;;  %v2020_v43 = vcombine.high %v2006_v60, %v3635_v33  ;;  %v2027_v49 = vrot.slane %v2006_v60, %v3638_v37  ;;  %v2002_v3 = vpack.c.bf16 %v1952_v62, %v1949_v54 }
 0x8db   : > { %v3181_v4 = vpop.f32.mrf.mxu1  ;;  %v3186_v5 = vpop.f32.mrf.mxu0 }
 0x8dc   : > { %v2034_v6 = vrot.slane %v2020_v43, %v3638_v37  ;;  %v2035_v7 = vcombine.high %v2027_v49, %v3416_v32  ;;  %v2069_v8 = vcombine.high %v2010_v1, %v3635_v33  ;;  %v2042_v9 = vrot.slane %v2027_v49, %v3642_v51 }
 0x8dd   : > { %v2076_v10 = vrot.slane %v2010_v1, %v3638_v37  ;;  %v1996_v11 = vpop.f32.mrf.mxu0  ;;  %v2016_v15 = vshrl.u32 %v2002_v3, 16 }
 0x8de   : > { %v2049_v12 = vrot.slane %v2035_v7, %v3642_v51  ;;  %v2050_v13 = vcombine.high %v2034_v6, %v3416_v32  ;;  %v2083_v14 = vrot.slane %v2069_v8, %v3638_v37  ;;  %v2057_v16 = vrot.slane %v2034_v6, %v3642_v51 }
 0x8df   : > { %v2084_v17 = vcombine.high %v2076_v10, %v3416_v32  ;;  %v2091_v19 = vrot.slane %v2076_v10, %v3642_v51  ;;  %v2003_v20 = vpack.c.bf16 %v1996_v11, %v1993_v63  ;;  %v3187_v23 = vpop.f32.mrf.mxu0 }
 0x8e0   : > { %v2064_v2 = vrot.slane %v2050_v13, %v3642_v51  ;;  %v2099_v24 = vcombine.high %v2083_v14, %v3416_v32  ;;  %v2106_v25 = vrot.slane %v2083_v14, %v3642_v51  ;;  %v2216_v26 = vcombine.low %v2042_v9, %v2049_v12 }
 0x8e1   : > { %v2098_v27 = vrot.slane %v2084_v17, %v3642_v51  ;;  %v3057_v44 = vcombine.high %v2042_v9, %v2049_v12  ;;  %v2014_v45 = vpack.i.b16 %v2003_v20, %v2002_v3  ;;  %v2017_v28 = vshrl.u32 %v2003_v20, 16  ;;  %v3278_v9 = vld [vmem:[%s3529_s20 + $0x8] sm:$0xff]   ;;  %v3279_v17 = vld [vmem:[%s3529_s20] sm:$0xff]   ;;  %s3417_s20 = smov 16  }
 0x8e2   : > { %v2113_v29 = vrot.slane %v2099_v24, %v3642_v51  ;;  %v2223_v30 = vrot.slane %v2216_v26, %v3638_v37  ;;  %v2232_v31 = vcombine.low %v2057_v16, %v2064_v2  ;;  %v3058_v34 = vcombine.high %v2057_v16, %v2064_v2  ;;  %3188 = vmatprep.subr.bf16.mxu1 %v3278_v9 }
 0x8e3   : > { %v2231_v18 = vrot.slane %v3057_v44, %v3638_v37  ;;  %v2265_v22 = vcombine.low %v2091_v19, %v2098_v27  ;;  %v3059_v35 = vcombine.high %v2091_v19, %v2098_v27  ;;  %v2018_v38 = vpack.i.b16 %v2017_v28, %v2016_v15  ;;  %3189 = vmatpush3.bf16.msra.mxu1 %v3278_v9 }
 0x8e4   : > { %v2239_v39 = vrot.slane %v2232_v31, %v3638_v37  ;;  %v2247_v36 = vrot.slane %v3058_v34, %v3638_v37  ;;  %v2281_v47 = vcombine.low %v2106_v25, %v2113_v29  ;;  %v3060_v40 = vcombine.high %v2106_v25, %v2113_v29  ;;  %3190 = vmatprep.subr.bf16.mxu1 %v3279_v17 }
 0x8e5   : > { %v2272_v53 = vrot.slane %v2265_v22, %v3638_v37  ;;  %v2118_v41 = vcombine.high %v2014_v45, %v3635_v33  ;;  %v2125_v42 = vrot.slane %v2014_v45, %v3638_v37  ;;  %v2167_v46 = vcombine.high %v2018_v38, %v3635_v33 }
 0x8e6   : > { %v2174_v48 = vrot.slane %v2018_v38, %v3638_v37  ;;  %v2248_v50 = vcombine.low %v2223_v30, %v2231_v18  ;;  %v2256_v59 = vcombine.low %v2239_v39, %v2247_v36  ;;  %v2280_v52 = vrot.slane %v3059_v35, %v3638_v37 }
 0x8e7   : > { %v2132_v54 = vrot.slane %v2118_v41, %v3638_v37  ;;  %v2133_v21 = vcombine.high %v2125_v42, %v3416_v32  ;;  %v2140_v55 = vrot.slane %v2125_v42, %v3642_v51  ;;  %v2181_v57 = vrot.slane %v2167_v46, %v3638_v37  ;;  %3191 = vmatpush3.bf16.msra.mxu1 %v3279_v17 }
 0x8e8   : > { %v2182_v58 = vcombine.high %v2174_v48, %v3416_v32  ;;  %v2189_v60 = vrot.slane %v2174_v48, %v3642_v51  ;;  %v2288_v33 = vrot.slane %v2281_v47, %v3638_v37  ;;  %v2255_v1 = vrot.slane %v2248_v50, %v3642_v51 }
 0x8e9   : > { %v2147_v61 = vrot.slane %v2133_v21, %v3642_v51  ;;  %v2148_v62 = vcombine.high %v2132_v54, %v3416_v32  ;;  %v2155_v63 = vrot.slane %v2132_v54, %v3642_v51  ;;  %v2197_v49 = vcombine.high %v2181_v57, %v3416_v32 }
 0x8ea   : > { %v2196_v43 = vrot.slane %v2182_v58, %v3642_v51  ;;  %v2204_v3 = vrot.slane %v2181_v57, %v3642_v51  ;;  %v2263_v4 = vrot.slane %v2256_v59, %v3642_v51  ;;  %v2296_v8 = vrot.slane %v3060_v40, %v3638_v37  ;;  %v3342_v58 = vld [vmem:[#allocation2] sm:$0xff] }
 0x8eb   : > { %v2162_v5 = vrot.slane %v2148_v62, %v3642_v51  ;;  %v2314_v6 = vcombine.low %v2140_v55, %v2147_v61  ;;  %v3061_v7 = vcombine.high %v2140_v55, %v2147_v61  ;;  %v2211_v10 = vrot.slane %v2197_v49, %v3642_v51  ;;  %v3343_v61 = vld [vmem:[#allocation2 + $0x18] sm:$0xff] }
 0x8ec   : > { %v2363_v11 = vcombine.low %v2189_v60, %v2196_v43  ;;  %v3063_v12 = vcombine.high %v2189_v60, %v2196_v43  ;;  %v2297_v13 = vcombine.low %v2272_v53, %v2280_v52  ;;  %v2305_v26 = vcombine.low %v2288_v33, %v2296_v8  ;;  %v3344_v43 = vld [vmem:[#allocation2 + $0x8] sm:$0xff] }
 0x8ed   : > { %v2321_v14 = vrot.slane %v2314_v6, %v3638_v37  ;;  %v2329_v32 = vrot.slane %v3061_v7, %v3638_v37  ;;  %v2330_v15 = vcombine.low %v2155_v63, %v2162_v5  ;;  %v3062_v16 = vcombine.high %v2155_v63, %v2162_v5 }
 0x8ee   : > { %v2370_v19 = vrot.slane %v2363_v11, %v3638_v37  ;;  %v2378_v20 = vrot.slane %v3063_v12, %v3638_v37  ;;  %v2379_v23 = vcombine.low %v2204_v3, %v2211_v10  ;;  %v3064_v2 = vcombine.high %v2204_v3, %v2211_v10  ;;  %v3345_v3 = vld [vmem:[#allocation2 + $0x10] sm:$0xff] }
 0x8ef   : > { %v2337_v24 = vrot.slane %v2330_v15, %v3638_v37  ;;  %v2345_v25 = vrot.slane %v3062_v16, %v3638_v37  ;;  %v2264_v27 = vcombine.low %v2255_v1, %v2263_v4  ;;  %v2346_v44 = vcombine.low %v2321_v14, %v2329_v32 }
 0x8f0   : > { %v2386_v45 = vrot.slane %v2379_v23, %v3638_v37  ;;  %v2394_v28 = vrot.slane %v3064_v2, %v3638_v37  ;;  %v2304_v29 = vrot.slane %v2297_v13, %v3642_v51  ;;  %v2312_v30 = vrot.slane %v2305_v26, %v3642_v51 }
 0x8f1   : > { %v2354_v31 = vcombine.low %v2337_v24, %v2345_v25  ;;  %v2395_v34 = vcombine.low %v2370_v19, %v2378_v20  ;;  %v2353_v35 = vrot.slane %v2346_v44, %v3642_v51  ;;  %v2415_v47 = vshrl.u32 %v2264_v27, 16 }
 0x8f2   : > { %v2403_v18 = vcombine.low %v2386_v45, %v2394_v28  ;;  %v2313_v22 = vcombine.low %v2304_v29, %v2312_v30  ;;  %v3280_v45 = vld [vmem:[%s3534_s26 + $0x8] sm:$0xff]   ;;  %v3281_v28 = vld [vmem:[%s3534_s26] sm:$0xff]  }
 0x8f3   : > { %v2361_v38 = vrot.slane %v2354_v31, %v3642_v51  ;;  %v2402_v39 = vrot.slane %v2395_v34, %v3642_v51  ;;  %3196 = vmatprep.subr.bf16.mxu0 %v3280_v45 }
 0x8f4   : > { %v2410_v36 = vrot.slane %v2403_v18, %v3642_v51  ;;  %v2416_v53 = vshrl.u32 %v2313_v22, 16  ;;  %v2414_v40 = vpack.i.b16 %v2313_v22, %v2264_v27  ;;  %3197 = vmatpush3.bf16.msra.mxu0 %v3280_v45 }
 0x8f5   : > { %v2362_v37 = vcombine.low %v2353_v35, %v2361_v38  ;;  %3198 = vmatprep.subr.bf16.mxu0 %v3281_v28 }
 0x8f6   : > { %v2411_v41 = vcombine.low %v2402_v39, %v2410_v36  ;;  %v2417_v42 = vpack.i.b16 %v2416_v53, %v2415_v47 }
 0x8f7   : > { %v2421_v46 = vshrl.u32 %v2362_v37, 16 }
 0x8f8   : > { %v2422_v48 = vshrl.u32 %v2411_v41, 16  ;;  %v2420_v50 = vpack.i.b16 %v2411_v41, %v2362_v37  ;;  %2424 = vrot.lane.b32.xlu0 %v2417_v42, %s3417_s20  ;;  %3199 = vmatpush3.bf16.msra.mxu0 %v3281_v28  ;;  %v2570_v37 = vsub.s32 2, %v3611_v56  ;;  %v3891_v42 = vld [vmem:[%s3518_s12] sm:$0xff] }
 0x8fa   : > { %v2423_v59 = vpack.i.b16 %v2422_v48, %v2421_v46  ;;  %v2571_v46 = vrot.slane %v3891_v42, %v2570_v37  ;;  %v2578_v48 = vsub.s32 3, %v3611_v56 }
 0x8fc   : > { %2426 = vrot.lane.b32.xlu1 %v2423_v59, %s3417_s20 }
 0x96a   : > { %v2425_v52 = vpop.permute.xlu0 %2424 }
 0x96b   : > { %v2430_v54 = vsel %vm1543_vm4, %v2414_v40, %v2425_v52 }
 0x96c   : > { %3192 = vmatprep.mubr.msk.bf16.mxu1 %vm750_vm2, %v2430_v54  ;;  %v2579_v54 = vrot.slane %v3891_v42, %v2578_v48 }
 0x96e   : > { %v2427_v51 = vpop.permute.xlu1 %2426 }
 0x96f   : > { %v2433_v21 = vsel %vm1543_vm4, %v2420_v50, %v2427_v51 }
 0x970   : > { %3193 = vmatmul.mubr.msk.bf16.vlgmr.msra.gmra.mxu1 %vm750_vm2, %v2433_v21 }
 0xa30   : > { %v3194_v55 = vpop.f32.mrf.mxu1 }
 0xa31   : > { %v3871_v4 = vadd.f32 %v3345_v3, %v3194_v55 }
 0xa32   : > { %v2484_v57 = vpop.f32.mrf.mxu1 }
 0xa33   : > { %v3863_v60 = vadd.f32 %v3342_v58, %v2484_v57  ;;  %v2522_v7 = vsel %vm750_vm2, %v3871_v4, 0.0 }
 0xa34   : > { %v3195_v33 = vpop.f32.mrf.mxu1 }
 0xa35   : > { %v3865_v62 = vadd.f32 %v3343_v61, %v3195_v33  ;;  %v2516_v63 = vsel %vm750_vm2, %v3863_v60, 0.0 }
 0xa36   : > { %2517 = vadd.xlane.f32.xlu1 %v2516_v63  ;;  %v2487_v1 = vpop.f32.mrf.mxu1 }
 0xa37   : > { %v3869_v49 = vadd.f32 %v3344_v43, %v2487_v1  ;;  %v2525_v5 = vsel %vm750_vm2, %v3865_v62, 0.0 }
 0xa39   : > { %v2519_v6 = vsel %vm750_vm2, %v3869_v49, 0.0 }
 0xa3a   : > { %2526 = vadd.xlane.f32.xlu1 %v2525_v5  ;;  %2520 = vadd.xlane.f32.xlu0 %v2519_v6 }
 0xa3e   : > { %2523 = vadd.xlane.f32.xlu0 %v2522_v7  ;;  %v3282_v7 = vld [vmem:[%s3540_s30 + $0x18] sm:$0xff]  }
 0xa3f   : > { %3204 = vmatprep.subr.bf16.mxu1 %v3282_v7 }
 0xa40   : > { %3205 = vmatpush3.bf16.msra.mxu1 %v3282_v7 }
 0xabf   : > { %v2518_v8 = vpop.xlane.xlu1 %2517 }
 0xac0   : > { %v2528_v9 = vmul.f32 0.03125, %v2518_v8  ;;  %v3283_v8 = vld [vmem:[%s3540_s30 + $0x10] sm:$0xff]  }
 0xac1   : > { %3206 = vmatprep.subr.bf16.mxu1 %v3283_v8 }
 0xac2   : > { %v2532_v10 = vsub.f32 %v3863_v60, %v2528_v9  ;;  %v3284_v9 = vld [vmem:[%s3540_s30 + $0x8] sm:$0xff]   ;;  %3207 = vmatpush3.bf16.msra.mxu1 %v3283_v8 }
 0xac3   : > { %v2527_v11 = vpop.xlane.xlu1 %2526  ;;  %v2521_v12 = vpop.xlane.xlu0 %2520  ;;  %3208 = vmatprep.subr.bf16.mxu1 %v3284_v9 }
 0xac4   : > { %v2531_v13 = vmul.f32 0.03125, %v2527_v11  ;;  %v2529_v14 = vmul.f32 0.03125, %v2521_v12  ;;  %v2536_v32 = vmul.f32 %v2532_v10, %v2532_v10  ;;  %v3069_v11 = vld [vmem:[%s485_s28] ss:$0 sm:$0xff] }
 0xac6   : > { %v2535_v15 = vsub.f32 %v3865_v62, %v2531_v13  ;;  %v2533_v16 = vsub.f32 %v3869_v49, %v2529_v14  ;;  %v2540_v17 = vsel %vm750_vm2, %v2536_v32, 0.0  ;;  %3209 = vmatpush3.bf16.msra.mxu1 %v3284_v9 }
 0xac7   : > { %2541 = vadd.xlane.f32.xlu0 %v2540_v17  ;;  %v2524_v19 = vpop.xlane.xlu0 %2523 }
 0xac8   : > { %v2530_v20 = vmul.f32 0.03125, %v2524_v19  ;;  %v2537_v23 = vmul.f32 %v2533_v16, %v2533_v16  ;;  %v2539_v25 = vmul.f32 %v2535_v15, %v2535_v15 }
 0xaca   : > { %v2534_v2 = vsub.f32 %v3871_v4, %v2530_v20  ;;  %v2543_v24 = vsel %vm750_vm2, %v2537_v23, 0.0  ;;  %v2549_v27 = vsel %vm750_vm2, %v2539_v25, 0.0 }
 0xacb   : > { %2544 = vadd.xlane.f32.xlu1 %v2543_v24 }
 0xacc   : > { %v2538_v26 = vmul.f32 %v2534_v2, %v2534_v2 }
 0xace   : > { %v2546_v44 = vsel %vm750_vm2, %v2538_v26, 0.0 }
 0xacf   : > { %2550 = vadd.xlane.f32.xlu1 %v2549_v27  ;;  %2547 = vadd.xlane.f32.xlu0 %v2546_v44 }
 0xb50   : > { %v2542_v29 = vpop.xlane.xlu0 %2541 }
 0xb51   : > { %v2552_v30 = vmul.f32 0.03125, %v2542_v29 }
 0xb53   : > { %v2556_v31 = vadd.f32 1e-05, %v2552_v30 }
 0xb54   : > { %v2545_v34 = vpop.xlane.xlu1 %2544 }
 0xb55   : > { %3326 = vrsqrt.f32 %v2556_v31  ;;  %v2553_v18 = vmul.f32 0.03125, %v2545_v34 }
 0xb57   : > { %v2557_v22 = vadd.f32 1e-05, %v2553_v18 }
 0xb58   : > { %v2551_v35 = vpop.xlane.xlu1 %2550  ;;  %v2548_v38 = vpop.xlane.xlu0 %2547 }
 0xb59   : > { %3328 = vrsqrt.f32 %v2557_v22  ;;  %v2555_v39 = vmul.f32 0.03125, %v2551_v35  ;;  %v2554_v36 = vmul.f32 0.03125, %v2548_v38 }
 0xb5b   : > { %v2559_v47 = vadd.f32 1e-05, %v2555_v39  ;;  %v2558_v53 = vadd.f32 1e-05, %v2554_v36 }
 0xb5d   : > { %3330 = vrsqrt.f32 %v2559_v47 }
 0xb5e   : > { %3332 = vrsqrt.f32 %v2558_v53 }
 0xb62   : > { %v3327_v40 = vpop.eup %3326 }
 0xb63   : > { %v2564_v41 = vmul.f32 %v3327_v40, %v2532_v10  ;;  %v3285_v10 = vld [vmem:[%s3540_s30] sm:$0xff]  }
 0xb64   : > { %3210 = vmatprep.subr.bf16.mxu1 %v3285_v10 }
 0xb65   : > { %v2572_v52 = vmul.f32 %v2571_v46, %v2564_v41  ;;  %3211 = vmatpush3.bf16.msra.mxu1 %v3285_v10 }
 0xb66   : > { %v3329_v50 = vpop.eup %3328 }
 0xb67   : > { %v2565_v59 = vmul.f32 %v3329_v50, %v2533_v16  ;;  %v2580_v58 = vadd.f32 %v2579_v54, %v2572_v52 }
 0xb69   : > { %v2573_v51 = vmul.f32 %v2571_v46, %v2565_v59 }
 0xb6a   : > { %v3331_v21 = vpop.eup %3330 }
 0xb6b   : > { %v3333_v55 = vpop.eup %3332  ;;  %v2567_v57 = vmul.f32 %v3331_v21, %v2535_v15  ;;  %v2581_v33 = vadd.f32 %v2579_v54, %v2573_v51 }
 0xb6c   : > { %v2566_v61 = vmul.f32 %v3333_v55, %v2534_v2 }
 0xb6d   : > { %v2584_v63 = vpack.c.bf16 %v2581_v33, %v2580_v58  ;;  %v2575_v1 = vmul.f32 %v2571_v46, %v2567_v57 }
 0xb6e   : > { %v2574_v43 = vmul.f32 %v2571_v46, %v2566_v61 }
 0xb6f   : > { %3200 = vmatprep.mubr.msk.bf16.mxu0 %vm750_vm2, %v2584_v63  ;;  %v2583_v3 = vadd.f32 %v2579_v54, %v2575_v1  ;;  %v2699_v1 = vsub.s32 4, %v3611_v56 }
 0xb70   : > { %v2582_v5 = vadd.f32 %v2579_v54, %v2574_v43 }
 0xb71   : > { %v2700_v43 = vrot.slane %v3891_v42, %v2699_v1 }
 0xb72   : > { %v2585_v6 = vpack.c.bf16 %v2583_v3, %v2582_v5 }
 0xb74   : > { %3201 = vmatmul.mubr.msk.bf16.vlgmr.msra.gmra.mxu0 %vm750_vm2, %v2585_v6 }
 0xc34   : > { %v3202_v12 = vpop.f32.mrf.mxu0 }
 0xc35   : > { %v2653_v13 = vadd.f32 %v3202_v12, %v3069_v11 }
 0xc36   : > { %v2644_v14 = vpop.f32.mrf.mxu0 }
 0xc37   : > { %v2665_v32 = vmul.f32 0.044715, %v2653_v13  ;;  %v2645_v15 = vadd.f32 %v3069_v11, %v2644_v14  ;;  %v2661_v21 = vmul.f32 0.5, %v2653_v13 }
 0xc38   : > { %v3203_v16 = vpop.f32.mrf.mxu0 }
 0xc39   : > { %v2669_v17 = vmul.f32 %v2665_v32, %v2653_v13  ;;  %v2663_v19 = vmul.f32 0.044715, %v2645_v15  ;;  %v2656_v20 = vadd.f32 %v3203_v16, %v3069_v11  ;;  %v2659_v52 = vmul.f32 0.5, %v2645_v15 }
 0xc3a   : > { %v2647_v23 = vpop.f32.mrf.mxu0 }
 0xc3b   : > { %v2673_v2 = vmul.f32 %v2669_v17, %v2653_v13  ;;  %v2667_v24 = vmul.f32 %v2663_v19, %v2645_v15  ;;  %v2666_v25 = vmul.f32 0.044715, %v2656_v20  ;;  %v2648_v26 = vadd.f32 %v3069_v11, %v2647_v23 }
 0xc3c   : > { %v2662_v50 = vmul.f32 0.5, %v2656_v20 }
 0xc3d   : > { %v2677_v27 = vadd.f32 %v2673_v2, %v2653_v13  ;;  %v2671_v44 = vmul.f32 %v2667_v24, %v2645_v15  ;;  %v2670_v45 = vmul.f32 %v2666_v25, %v2656_v20  ;;  %v2664_v28 = vmul.f32 0.044715, %v2648_v26 }
 0xc3e   : > { %v2660_v54 = vmul.f32 0.5, %v2648_v26 }
 0xc3f   : > { %v2681_v29 = vmul.f32 0.7978846, %v2677_v27  ;;  %v2675_v30 = vadd.f32 %v2671_v44, %v2645_v15  ;;  %v2674_v31 = vmul.f32 %v2670_v45, %v2656_v20  ;;  %v2668_v34 = vmul.f32 %v2664_v28, %v2648_v26 }
 0xc41   : > { %v2679_v18 = vmul.f32 0.7978846, %v2675_v30  ;;  %v2678_v22 = vadd.f32 %v2674_v31, %v2656_v20  ;;  %v2672_v35 = vmul.f32 %v2668_v34, %v2648_v26  ;;  %3334 = vtanh.f32 %v2681_v29 }
 0xc43   : > { %v2682_v38 = vmul.f32 0.7978846, %v2678_v22  ;;  %3336 = vtanh.f32 %v2679_v18  ;;  %v2676_v39 = vadd.f32 %v2672_v35, %v2648_v26 }
 0xc45   : > { %3338 = vtanh.f32 %v2682_v38  ;;  %v2680_v36 = vmul.f32 0.7978846, %v2676_v39 }
 0xc47   : > { %3340 = vtanh.f32 %v2680_v36 }
 0xc4e   : > { %v3335_v47 = vpop.eup %3334 }
 0xc4f   : > { %v2689_v59 = vadd.f32 1.0, %v3335_v47 }
 0xc50   : > { %v3337_v53 = vpop.eup %3336 }
 0xc51   : > { %v2687_v41 = vadd.f32 1.0, %v3337_v53  ;;  %v2693_v33 = vmul.f32 %v2689_v59, %v2661_v21 }
 0xc52   : > { %v3339_v37 = vpop.eup %3338 }
 0xc53   : > { %v2690_v40 = vadd.f32 1.0, %v3339_v37  ;;  %v2691_v57 = vmul.f32 %v2687_v41, %v2659_v52 }
 0xc54   : > { %v3341_v46 = vpop.eup %3340 }
 0xc55   : > { %v2688_v51 = vadd.f32 1.0, %v3341_v46  ;;  %v2694_v55 = vmul.f32 %v2690_v40, %v2662_v50 }
 0xc57   : > { %v2692_v58 = vmul.f32 %v2688_v51, %v2660_v54  ;;  %v2696_v63 = vpack.c.bf16 %v2694_v55, %v2693_v33 }
 0xc59   : > { %v2695_v61 = vpack.c.bf16 %v2692_v58, %v2691_v57 }
 0xc5b   : > { %3212 = vmatprep.mubr.msk.bf16.mxu1 %vm2725_vm5, %v2695_v61 }
 0xc5c   : > { %3213 = vmatmul.mubr.msk.bf16.vlgmr.msra.gmra.mxu1 %vm2725_vm5, %v2696_v63 }
 0xd1c   : > { %v3214_v3 = vpop.f32.mrf.mxu1 }
 0xd1d   : > { %v2775_v5 = vadd.f32 %v3214_v3, %v2700_v43 }
 0xd1e   : > { %v2766_v6 = vpop.f32.mrf.mxu1 }
 0xd1f   : > { %v2783_v7 = vadd.f32 %v2775_v5, %v3871_v4  ;;  %v2767_v8 = vadd.f32 %v2766_v6, %v2700_v43 }
 0xd20   : > { %v3215_v9 = vpop.f32.mrf.mxu1 }
 0xd21   : > { %2787 = vst.msk [vmem:[#allocation2 + $0x10] sm:$0xff] %vm750_vm2, %v2783_v7  ;;  %v2781_v10 = vadd.f32 %v2767_v8, %v3863_v60  ;;  %v2778_v11 = vadd.f32 %v3215_v9, %v2700_v43 }
 0xd22   : > { %v2769_v12 = vpop.f32.mrf.mxu1 }
 0xd23   : > { %2785 = vst.msk [vmem:[#allocation2] sm:$0xff] %vm750_vm2, %v2781_v10  ;;  %v2784_v13 = vadd.f32 %v2778_v11, %v3865_v62  ;;  %v2770_v14 = vadd.f32 %v2769_v12, %v2700_v43  ;;  %2792 = sbr.rel (%p3080_p6) target bundleno = 3702 (0xe76), region = 72 }
 0xd25   : > { %2788 = vst.msk [vmem:[#allocation2 + $0x18] sm:$0xff] %vm750_vm2, %v2784_v13  ;;  %v2782_v42 = vadd.f32 %v2770_v14, %v3869_v49 }
 0xd27   : > { %2786 = vst.msk [vmem:[#allocation2 + $0x8] sm:$0xff] %vm750_vm2, %v2782_v42 }
 0xd28   : > { %v2793_v4 = vsel %vm750_vm2, %v2781_v10, 0.0  ;;  %v2799_v60 = vsel %vm750_vm2, %v2783_v7, 0.0  ;;  %v2796_v32 = vsel %vm750_vm2, %v2782_v42, 0.0  ;;  %v2802_v62 = vsel %vm750_vm2, %v2784_v13, 0.0 }
 0xd29   : > { %2794 = vadd.xlane.f32.xlu0 %v2793_v4  ;;  %2800 = vadd.xlane.f32.xlu1 %v2799_v60  ;;  %v2848_v59 = vrot.slane %v3505_v0, %v2578_v48  ;;  %v2856_v51 = vrot.slane %v3505_v0, %v2699_v1  ;;  %vm2882_vm6 = vcmask 253952  }
 0xd2d   : > { %2797 = vadd.xlane.f32.xlu0 %v2796_v32  ;;  %2803 = vadd.xlane.f32.xlu1 %v2802_v62 }
 0xdb2   : > { %v2795_v15 = vpop.xlane.xlu0 %2794  ;;  %v2801_v16 = vpop.xlane.xlu1 %2800 }
 0xdb3   : > { %v2805_v49 = vmul.f32 0.03125, %v2795_v15  ;;  %v2807_v17 = vmul.f32 0.03125, %v2801_v16 }
 0xdb5   : > { %v2809_v19 = vsub.f32 %v2781_v10, %v2805_v49  ;;  %v2811_v20 = vsub.f32 %v2783_v7, %v2807_v17 }
 0xdb6   : > { %v2798_v23 = vpop.xlane.xlu0 %2797  ;;  %v2804_v2 = vpop.xlane.xlu1 %2803 }
 0xdb7   : > { %v2806_v24 = vmul.f32 0.03125, %v2798_v23  ;;  %v2808_v25 = vmul.f32 0.03125, %v2804_v2  ;;  %v2813_v26 = vmul.f32 %v2809_v19, %v2809_v19  ;;  %v2815_v27 = vmul.f32 %v2811_v20, %v2811_v20 }
 0xdb9   : > { %v2810_v44 = vsub.f32 %v2782_v42, %v2806_v24  ;;  %v2812_v45 = vsub.f32 %v2784_v13, %v2808_v25  ;;  %v2817_v28 = vsel %vm750_vm2, %v2813_v26, 0.0  ;;  %v2823_v29 = vsel %vm750_vm2, %v2815_v27, 0.0 }
 0xdba   : > { %2818 = vadd.xlane.f32.xlu0 %v2817_v28 }
 0xdbb   : > { %v2814_v30 = vmul.f32 %v2810_v44, %v2810_v44  ;;  %v2816_v31 = vmul.f32 %v2812_v45, %v2812_v45 }
 0xdbd   : > { %v2820_v34 = vsel %vm750_vm2, %v2814_v30, 0.0  ;;  %v2826_v18 = vsel %vm750_vm2, %v2816_v31, 0.0 }
 0xdbe   : > { %2824 = vadd.xlane.f32.xlu0 %v2823_v29  ;;  %2821 = vadd.xlane.f32.xlu1 %v2820_v34 }
 0xdc2   : > { %2827 = vadd.xlane.f32.xlu1 %v2826_v18 }
 0xe43   : > { %v2819_v22 = vpop.xlane.xlu0 %2818 }
 0xe44   : > { %v2829_v35 = vmul.f32 0.03125, %v2819_v22 }
 0xe46   : > { %v2833_v38 = vadd.f32 1e-05, %v2829_v35 }
 0xe47   : > { %v2822_v39 = vpop.xlane.xlu1 %2821  ;;  %v2825_v36 = vpop.xlane.xlu0 %2824 }
 0xe48   : > { %3347 = vrsqrt.f32 %v2833_v38  ;;  %v2830_v47 = vmul.f32 0.03125, %v2822_v39  ;;  %v2831_v53 = vmul.f32 0.03125, %v2825_v36 }
 0xe4a   : > { %v2834_v37 = vadd.f32 1e-05, %v2830_v47  ;;  %v2835_v40 = vadd.f32 1e-05, %v2831_v53 }
 0xe4b   : > { %v2828_v41 = vpop.xlane.xlu1 %2827 }
 0xe4c   : > { %3349 = vrsqrt.f32 %v2834_v37  ;;  %v2832_v46 = vmul.f32 0.03125, %v2828_v41 }
 0xe4d   : > { %3351 = vrsqrt.f32 %v2835_v40 }
 0xe4e   : > { %v2836_v50 = vadd.f32 1e-05, %v2832_v46 }
 0xe50   : > { %3353 = vrsqrt.f32 %v2836_v50 }
 0xe55   : > { %v3348_v52 = vpop.eup %3347 }
 0xe56   : > { %v2841_v54 = vmul.f32 %v3348_v52, %v2809_v19 }
 0xe58   : > { %v2849_v21 = vmul.f32 %v2848_v59, %v2841_v54 }
 0xe59   : > { %v3350_v55 = vpop.eup %3349 }
 0xe5a   : > { %v3352_v57 = vpop.eup %3351  ;;  %v2842_v58 = vmul.f32 %v3350_v55, %v2810_v44  ;;  %v2857_v61 = vadd.f32 %v2856_v51, %v2849_v21 }
 0xe5b   : > { %v2843_v33 = vmul.f32 %v3352_v57, %v2811_v20 }
 0xe5c   : > { %v2850_v63 = vmul.f32 %v2848_v59, %v2842_v58  ;;  %v2861_v7 = vsel %vm750_vm2, %v2857_v61, 0.0 }
 0xe5d   : > { %v3354_v43 = vpop.eup %3353  ;;  %v2851_v3 = vmul.f32 %v2848_v59, %v2843_v33 }
 0xe5e   : > { %v2858_v5 = vadd.f32 %v2856_v51, %v2850_v63  ;;  %v2844_v6 = vmul.f32 %v3354_v43, %v2812_v45 }
 0xe5f   : > { %v2859_v8 = vadd.f32 %v2856_v51, %v2851_v3 }
 0xe60   : > { %v2862_v48 = vsel %vm750_vm2, %v2858_v5, 0.0  ;;  %v2852_v9 = vmul.f32 %v2848_v59, %v2844_v6 }
 0xe61   : > { %v2863_v56 = vadd.f32 %v2862_v48, %v2861_v7  ;;  %v2870_v1 = vsel %vm750_vm2, %v2859_v8, 0.0 }
 0xe62   : > { %v2860_v10 = vadd.f32 %v2856_v51, %v2852_v9 }
 0xe63   : > { %v2864_v0 = vrot.slane %v2863_v56, 4 }
 0xe64   : > { %v2871_v11 = vsel %vm750_vm2, %v2860_v10, 0.0 }
 0xe65   : > { %v2865_v12 = vadd.f32 %v2864_v0, %v2863_v56  ;;  %v2872_v13 = vadd.f32 %v2871_v11, %v2870_v1 }
 0xe67   : > { %v2866_v14 = vrot.slane %v2865_v12, 2  ;;  %v2873_v42 = vrot.slane %v2872_v13, 4 }
 0xe69   : > { %v2867_v4 = vadd.f32 %v2866_v14, %v2865_v12  ;;  %v2874_v60 = vadd.f32 %v2873_v42, %v2872_v13 }
 0xe6b   : > { %v2868_v32 = vrot.slane %v2867_v4, 1  ;;  %v2875_v62 = vrot.slane %v2874_v60, 2 }
 0xe6d   : > { %v2869_v15 = vadd.f32 %v2868_v32, %v2867_v4  ;;  %v2876_v16 = vadd.f32 %v2875_v62, %v2874_v60 }
 0xe6f   : > { %v2880_v49 = vmul.f32 0.0625, %v2869_v15  ;;  %v2877_v17 = vrot.slane %v2876_v16, 1 }
 0xe71   : > { %2883 = vst.msk [vmem:[#allocation3] sm:$0x1] %vm2882_vm6, %v2880_v49  ;;  %v2878_v19 = vadd.f32 %v2877_v17, %v2876_v16 }
 0xe73   : > { %v2881_v20 = vmul.f32 0.0625, %v2878_v19 }
 0xe75   : > { %2884 = vst.msk [vmem:[#allocation3 + $0x1] sm:$0x1] %vm2882_vm6, %v2881_v20 }
 0xe76 PF: > { %s3983_s17 = sadd.s32 4294967295, %s3405_s19   ;;  %s3418_s28 = smov [#allocation3]  }
 0xe77   : > { %p3942_p7 = scmp.eq.s32.totalorder %s3983_s17, 1  ;;  %s2894_s30 = sshll.u32 %s3418_s28, 4  ;;  %s2895_s30 = int_to_ptr.vmem [resolvable:$true] %s2894_s30 }
 0xe78   : > { %s3355_s14 = scalar_lea.vmem %s2895_s30, 32  ;;  %p3362_p11 = scmp.lt.s32.totalorder %s2895_s30, %s2895_s30 }
 0xe79   : > { %p3356_p8 = scmp.ne.s32.totalorder %s2895_s30, %s3355_s14  ;;  %p3363_p12 = scmp.lt.s32.totalorder %s3355_s14, %s3355_s14 }
 0xe7b   : > { %p3357_p9 = pnand %p3356_p8, %p3942_p7  ;;  %p3364_p13 = por %p3363_p12, %p3362_p11 }
 0xe7d   : > { %p3358_p10 = pneg %p3357_p9 }
 0xe7f   : > { %p3365_p0 = pnand %p3364_p13, %p3358_p10 }
 0xe81   : > { %3368 = shalt.err (!%p3365_p0)
}
 0xe82   : > { %s3419_s15 = smov 1  }
 0xe83   : > { %3217 = dma.vmem_to_hbm [thread:$0]  (%p3942_p7), %s2895_s30, 32, %s3979_s11, [#allocation4], %s3417_s20, %s3417_s20, %s3419_s15  }
 0xe84   : > { %3392 = dma.done.wait (%p3942_p7), [#allocation4], 32  }
 0xe85   : > { %3394 = vsyncadd (%p3942_p7), [#allocation4], 4294967264 }
 0xe86 PF: > { %s22_s19 = sadd.s32 1, %s3405_s19   ;;  %s3985_s4 = sld [smem:[#allocation6_spill]] }
 0xe87   : > { %p19_p1 = scmp.ge.s32.totalorder %s22_s19, 4   ;;  %s3986_s17 = smov %s3401_s18 }
 0xe89   :  { %21 = sbr.rel (!%p19_p1) target bundleno = 4 (0x4), region = 118 }
 0xe8c   : > { %s3987_s18 = smov %s3985_s4 }
 0xe8e   :  { %2910 = vsyncpa [#allocation4], 1 }
 0xe8f   :  { %2912 = vsyncpa [#allocation4 + $0x1], 1 }

</bundles_post_ra>
